<compile_context>
chip_gen: v7x
topology: tpu7x:2x2x1
jax: 0.10.0
libtpu: 0.0.40
codegen_flags: <defaults>
</compile_context>

<pallas_src>
import functools

import jax
import jax.numpy as jnp
import numpy as np
from jax import lax
from jax.experimental import pallas as pl
from jax.experimental.pallas import tpu as pltpu


# ----------------------------------------------------------------------------
# Pallas kernel: GRU recurrence over one time slab (input projection precomputed)
# ----------------------------------------------------------------------------
def _gru_recurrence_kernel(t_blk, gi_ref, whh_ref, bhh_ref, out_ref, h_scratch):
    # Grid = (batch_blocks, time_blocks).  Correctness REQUIRES batch on the outer
    # axis and time on the inner "arbitrary" axis: h_scratch carries the hidden
    # state across time blocks and is reset when a new batch block starts.
    ts = pl.program_id(1)

    @pl.when(ts == 0)
    def _init():
        h_scratch[...] = jnp.zeros_like(h_scratch)

    Hp = h_scratch.shape[-1]
    whh = whh_ref[...]          # (H_pad, 3*H_pad), VMEM-resident across the grid
    bhh = bhh_ref[...]          # (1, 3*H_pad)

    def step(t, h_prev):
        gi = gi_ref[t]          # (B_blk, 3*H_pad)  precomputed x @ W_ih + b_ih
        gh = jnp.dot(h_prev, whh, preferred_element_type=jnp.float32) + bhh
        # Gate order r, z, n (torch GRU layout); slices are 128-lane aligned.
        r = jax.nn.sigmoid(gi[:, 0:Hp] + gh[:, 0:Hp])
        z = jax.nn.sigmoid(gi[:, Hp:2 * Hp] + gh[:, Hp:2 * Hp])
        n = jnp.tanh(gi[:, 2 * Hp:3 * Hp] + r * gh[:, 2 * Hp:3 * Hp])
        h_new = (1.0 - z) * n + z * h_prev
        out_ref[t] = h_new      # lane-dense (B_blk, H_pad) unmasked store
        return h_new

    h_last = lax.fori_loop(0, t_blk, step, h_scratch[...],
                           unroll=True if t_blk <= 16 else 8)
    h_scratch[...] = h_last     # carry to the next time block


# ----------------------------------------------------------------------------
# Host-side packing helpers (run once under jit, outside the recurrence)
# ----------------------------------------------------------------------------
def _round_up(x, m):
    return ((x + m - 1) // m) * m


def _pack_gate_weight(w, H, H_pad):
    """torch (3H, H) gate-stacked weight -> fused, zero-padded (H_pad, 3*H_pad).

    Gate g occupies lane columns [g*H_pad, g*H_pad + H) so in-kernel gate slices
    land on 128-lane boundaries."""
    out = jnp.zeros((H_pad, 3 * H_pad), jnp.float32)
    for g in range(3):
        out = out.at[:H, g * H_pad:g * H_pad + H].set(
            w[g * H:(g + 1) * H, :].T.astype(jnp.float32))
    return out


def _pack_gate_bias(b, H, H_pad):
    out = jnp.zeros((1, 3 * H_pad), jnp.float32)
    for g in range(3):
        out = out.at[0, g * H_pad:g * H_pad + H].set(
            b[g * H:(g + 1) * H].astype(jnp.float32))
    return out


# ----------------------------------------------------------------------------
# EncoderRNN.forward
# ----------------------------------------------------------------------------
def encoder_forward(params, tokens):
    B, S = tokens.shape
    H = params["embedding"].shape[1]

    B_pad = _round_up(B, 8)                 # sublane alignment (f32)
    H_pad = _round_up(H, 128)               # lane alignment

    # Fill MXU rows: large batch blocks instead of 8-row pushes.
    B_blk = min(B_pad, 256)
    # TODO(synk): on v7x, when B_pad >= 2*B_blk, pick B_blk = B_pad // 2 (sublane-
    #             aligned) so the "parallel" batch axis shards across both TensorCores.
    nb = B_pad // B_blk

    # Time slab per grid step (amortizes ~0.35us/step pipeline overhead).
    T_blk = min(S, 128)
    S_pad = _round_up(S, T_blk)             # padded time steps compute garbage rows
                                            # that are sliced away on the host.

    # Fused + padded weights (done once).
    wih = _pack_gate_weight(params["w_ih"], H, H_pad)
    whh = _pack_gate_weight(params["w_hh"], H, H_pad)
    bih = _pack_gate_bias(params["b_ih"], H, H_pad)
    bhh = _pack_gate_bias(params["b_hh"], H, H_pad)

    # Embedding gather + dropout(identity), then the HOISTED input projection: one
    # big batched matmul in plain XLA, off the serial recurrence critical path.
    emb = params["embedding"][tokens].astype(jnp.float32)           # (B, S, H)
    emb = jnp.transpose(emb, (1, 0, 2))                              # (S, B, H)
    emb = jnp.pad(emb, ((0, S_pad - S), (0, B_pad - B), (0, H_pad - H)))
    gi = jnp.dot(emb.reshape(S_pad * B_pad, H_pad), wih,
                 preferred_element_type=jnp.float32) + bih
    gi = gi.reshape(S_pad, B_pad, 3 * H_pad)

    kernel = functools.partial(_gru_recurrence_kernel, T_blk)
    out_p = pl.pallas_call(
        kernel,
        out_shape=jax.ShapeDtypeStruct((S_pad, B_pad, H_pad), jnp.float32),
        grid_spec=pltpu.PrefetchScalarGridSpec(
            num_scalar_prefetch=0,
            grid=(nb, S_pad // T_blk),
            in_specs=[
                pl.BlockSpec((T_blk, B_blk, 3 * H_pad), lambda b, t: (t, b, 0)),  # gi
                pl.BlockSpec((H_pad, 3 * H_pad), lambda b, t: (0, 0)),            # W_hh
                pl.BlockSpec((1, 3 * H_pad), lambda b, t: (0, 0)),                # b_hh
            ],
            out_specs=pl.BlockSpec((T_blk, B_blk, H_pad), lambda b, t: (t, b, 0)),
            scratch_shapes=[pltpu.VMEM((B_blk, H_pad), jnp.float32)],             # h
        ),
        compiler_params=pltpu.CompilerParams(
            dimension_semantics=("parallel", "arbitrary")),
    )(gi, whh, bhh)

    output = jnp.transpose(out_p[:S, :B, :H], (1, 0, 2))             # (B, S, H)
    hidden = out_p[S - 1, :B, :H][None]                              # (1, B, H)
    return output, hidden


# ----------------------------------------------------------------------------
# Pure-JAX reference mirroring the PyTorch module (for verification)
# ----------------------------------------------------------------------------
def ref_forward(params, tokens):
    B, S = tokens.shape
    H = params["embedding"].shape[1]
    emb = params["embedding"][tokens]                                # (B, S, H)
    w_ih, w_hh = params["w_ih"], params["w_hh"]
    b_ih, b_hh = params["b_ih"], params["b_hh"]
    h = jnp.zeros((B, H), jnp.float32)
    outs = []
    for t in range(S):
        x = emb[:, t]
        gi = x @ w_ih.T + b_ih
        gh = h @ w_hh.T + b_hh
        r = jax.nn.sigmoid(gi[:, :H] + gh[:, :H])
        z = jax.nn.sigmoid(gi[:, H:2 * H] + gh[:, H:2 * H])
        n = jnp.tanh(gi[:, 2 * H:] + r * gh[:, 2 * H:])
        h = (1.0 - z) * n + z * h
        outs.append(h)
    return jnp.stack(outs, axis=1), h[None]


# ----------------------------------------------------------------------------
# Deterministic parameter init (shapes from the module __init__)
# ----------------------------------------------------------------------------
def init_params(key, input_size, hidden_size):
    H, V = hidden_size, input_size
    ks = jax.random.split(key, 6)

    def u(k, shape, fan_in):
        bound = 1.0 / np.sqrt(fan_in)
        return jax.random.uniform(k, shape, jnp.float32, -bound, bound)

    return {
        "embedding": jax.random.normal(ks[0], (V, H), jnp.float32) * 0.1,
        "w_ih": u(ks[1], (3 * H, H), H),
        "w_hh": u(ks[2], (3 * H, H), H),
        "b_ih": u(ks[3], (3 * H,), H),
        "b_hh": u(ks[4], (3 * H,), H),
    }


if __name__ == "__main__":
    B, S, H, V = 2, 8, 32, 16            # batch, seq len, hidden, vocab (input_size)

    key = jax.random.PRNGKey(0)
    kp, kt = jax.random.split(key, 2)
    params = init_params(kp, input_size=V, hidden_size=H)
    tokens = jax.random.randint(kt, (B, S), 0, V, dtype=jnp.int32)

    fwd = jax.jit(encoder_forward)
    output, hidden = fwd(params, tokens)
    jax.block_until_ready((output, hidden))

    ref_out, ref_hidden = ref_forward(params, tokens)
    np.testing.assert_allclose(np.asarray(output), np.asarray(ref_out), rtol=1e-4, atol=1e-4)
    np.testing.assert_allclose(np.asarray(hidden), np.asarray(ref_hidden), rtol=1e-4, atol=1e-4)

    assert output.shape == (B, S, H) and hidden.shape == (1, B, H)
    print("KERNEL_OK")
</pallas_src>

<mosaic_0001>
module attributes {stable_mosaic.version = 11 : i64} {
  func.func @_gru_recurrence_kernel(%arg0: i32, %arg1: i32, %arg2: memref<8x8x384xf32, #tpu.memory_space<vmem>>, %arg3: memref<128x384xf32, #tpu.memory_space<vmem>>, %arg4: memref<1x384xf32, #tpu.memory_space<vmem>>, %arg5: memref<8x8x128xf32, #tpu.memory_space<vmem>>, %arg6: memref<8x128xf32, #tpu.memory_space<vmem>>) attributes {dimension_semantics = [#tpu.dimension_semantics<parallel>, #tpu.dimension_semantics<arbitrary>], iteration_bounds = array<i64: 1, 1>, scalar_prefetch = 0 : i64, scratch_operands = 1 : i64, tpu.core_type = #tpu.core_type<tc>, window_params = [{transform_indices = @transform_0, window_bounds = array<i64: 8, 8, 384>}, {pipeline_mode = #tpu.pipeline_mode<synchronous>, transform_indices = @transform_1, window_bounds = array<i64: 128, 384>}, {pipeline_mode = #tpu.pipeline_mode<synchronous>, transform_indices = @transform_2, window_bounds = array<i64: 1, 384>}, {transform_indices = @transform_3, window_bounds = array<i64: 8, 8, 128>}]} {
    %c0_i32 = arith.constant 0 : i32
    %0 = arith.cmpi eq, %arg1, %c0_i32 : i32
    %1 = arith.extui %0 : i1 to i32
    %c0_i32_0 = arith.constant 0 : i32
    %2 = arith.cmpi ne, %1, %c0_i32_0 : i32
    scf.if %2 {
      %cst_72 = arith.constant 0.000000e+00 : f32
      %295 = vector.broadcast %cst_72 : f32 to vector<8x128xf32>
      %c0_73 = arith.constant 0 : index
      %c0_74 = arith.constant 0 : index
      %296 = vector.load %arg6[%c0_73, %c0_74] : memref<8x128xf32, #tpu.memory_space<vmem>>, vector<8x128xf32>
      tpu.vector_store %arg6[%c0_73, %c0_74], %295 {strides = array<i32>} : memref<8x128xf32, #tpu.memory_space<vmem>>, vector<8x128xf32>,
    } else {
    }
    %c0 = arith.constant 0 : index
    %c0_1 = arith.constant 0 : index
    %3 = vector.load %arg3[%c0, %c0_1] : memref<128x384xf32, #tpu.memory_space<vmem>>, vector<128x384xf32>
    %c0_2 = arith.constant 0 : index
    %c0_3 = arith.constant 0 : index
    %4 = vector.load %arg4[%c0_2, %c0_3] : memref<1x384xf32, #tpu.memory_space<vmem>>, vector<1x384xf32>
    %c0_4 = arith.constant 0 : index
    %c0_5 = arith.constant 0 : index
    %5 = vector.load %arg6[%c0_4, %c0_5] : memref<8x128xf32, #tpu.memory_space<vmem>>, vector<8x128xf32>
    %c0_i32_6 = arith.constant 0 : i32
    %6 = arith.index_cast %c0_i32_6 : i32 to index
    %c0_7 = arith.constant 0 : index
    %c0_8 = arith.constant 0 : index
    %7 = vector.load %arg2[%6, %c0_7, %c0_8] : memref<8x8x384xf32, #tpu.memory_space<vmem>>, vector<1x8x384xf32>
    %8 = vector.shape_cast %7 : vector<1x8x384xf32> to vector<8x384xf32>
    %cst = arith.constant dense<0.000000e+00> : vector<8x384xf32>
    %9 = tpu.matmul %5, %3, %cst {dimension_numbers = #tpu.dot_dimension_numbers<[1], [0], [0], [1], [0, 0, 1, 1], [], []>} : vector<8x128xf32>, vector<128x384xf32>, vector<8x384xf32> -> vector<8x384xf32>
    %10 = vector.broadcast %4 : vector<1x384xf32> to vector<8x384xf32>
    %11 = arith.addf %9, %10 : vector<8x384xf32>
    %12 = vector.extract_strided_slice %8 {offsets = [0, 0], sizes = [8, 128], strides = [1, 1]} : vector<8x384xf32> to vector<8x128xf32>
    %13 = vector.extract_strided_slice %11 {offsets = [0, 0], sizes = [8, 128], strides = [1, 1]} : vector<8x384xf32> to vector<8x128xf32>
    %14 = arith.addf %12, %13 : vector<8x128xf32>
    %15 = arith.negf %14 : vector<8x128xf32>
    %16 = math.exp %15 : vector<8x128xf32>
    %cst_9 = arith.constant 1.000000e+00 : f32
    %17 = vector.broadcast %cst_9 : f32 to vector<8x128xf32>
    %18 = arith.addf %17, %16 : vector<8x128xf32>
    %19 = arith.divf %17, %18 : vector<8x128xf32>
    %20 = vector.extract_strided_slice %8 {offsets = [0, 128], sizes = [8, 128], strides = [1, 1]} : vector<8x384xf32> to vector<8x128xf32>
    %21 = vector.extract_strided_slice %11 {offsets = [0, 128], sizes = [8, 128], strides = [1, 1]} : vector<8x384xf32> to vector<8x128xf32>
    %22 = arith.addf %20, %21 : vector<8x128xf32>
    %23 = arith.negf %22 : vector<8x128xf32>
    %24 = math.exp %23 : vector<8x128xf32>
    %cst_10 = arith.constant 1.000000e+00 : f32
    %25 = vector.broadcast %cst_10 : f32 to vector<8x128xf32>
    %26 = arith.addf %25, %24 : vector<8x128xf32>
    %27 = arith.divf %25, %26 : vector<8x128xf32>
    %28 = vector.extract_strided_slice %8 {offsets = [0, 256], sizes = [8, 128], strides = [1, 1]} : vector<8x384xf32> to vector<8x128xf32>
    %29 = vector.extract_strided_slice %11 {offsets = [0, 256], sizes = [8, 128], strides = [1, 1]} : vector<8x384xf32> to vector<8x128xf32>
    %30 = arith.mulf %19, %29 : vector<8x128xf32>
    %31 = arith.addf %28, %30 : vector<8x128xf32>
    %32 = math.tanh %31 : vector<8x128xf32>
    %cst_11 = arith.constant 1.000000e+00 : f32
    %33 = vector.broadcast %cst_11 : f32 to vector<8x128xf32>
    %34 = arith.subf %33, %27 : vector<8x128xf32>
    %35 = arith.mulf %34, %32 : vector<8x128xf32>
    %36 = arith.mulf %27, %5 : vector<8x128xf32>
    %37 = arith.addf %35, %36 : vector<8x128xf32>
    %38 = arith.index_cast %c0_i32_6 : i32 to index
    %c0_12 = arith.constant 0 : index
    %c0_13 = arith.constant 0 : index
    %39 = vector.load %arg5[%38, %c0_12, %c0_13] : memref<8x8x128xf32, #tpu.memory_space<vmem>>, vector<1x8x128xf32>
    %40 = vector.shape_cast %39 : vector<1x8x128xf32> to vector<8x128xf32>
    %41 = vector.shape_cast %37 : vector<8x128xf32> to vector<1x8x128xf32>
    tpu.vector_store %arg5[%38, %c0_12, %c0_13], %41 {strides = array<i32>} : memref<8x8x128xf32, #tpu.memory_space<vmem>>, vector<1x8x128xf32>,
    %c1_i32 = arith.constant 1 : i32
    %42 = arith.index_cast %c1_i32 : i32 to index
    %c0_14 = arith.constant 0 : index
    %c0_15 = arith.constant 0 : index
    %43 = vector.load %arg2[%42, %c0_14, %c0_15] : memref<8x8x384xf32, #tpu.memory_space<vmem>>, vector<1x8x384xf32>
    %44 = vector.shape_cast %43 : vector<1x8x384xf32> to vector<8x384xf32>
    %cst_16 = arith.constant dense<0.000000e+00> : vector<8x384xf32>
    %45 = tpu.matmul %37, %3, %cst_16 {dimension_numbers = #tpu.dot_dimension_numbers<[1], [0], [0], [1], [0, 0, 1, 1], [], []>} : vector<8x128xf32>, vector<128x384xf32>, vector<8x384xf32> -> vector<8x384xf32>
    %46 = vector.broadcast %4 : vector<1x384xf32> to vector<8x384xf32>
    %47 = arith.addf %45, %46 : vector<8x384xf32>
    %48 = vector.extract_strided_slice %44 {offsets = [0, 0], sizes = [8, 128], strides = [1, 1]} : vector<8x384xf32> to vector<8x128xf32>
    %49 = vector.extract_strided_slice %47 {offsets = [0, 0], sizes = [8, 128], strides = [1, 1]} : vector<8x384xf32> to vector<8x128xf32>
    %50 = arith.addf %48, %49 : vector<8x128xf32>
    %51 = arith.negf %50 : vector<8x128xf32>
    %52 = math.exp %51 : vector<8x128xf32>
    %cst_17 = arith.constant 1.000000e+00 : f32
    %53 = vector.broadcast %cst_17 : f32 to vector<8x128xf32>
    %54 = arith.addf %53, %52 : vector<8x128xf32>
    %55 = arith.divf %53, %54 : vector<8x128xf32>
    %56 = vector.extract_strided_slice %44 {offsets = [0, 128], sizes = [8, 128], strides = [1, 1]} : vector<8x384xf32> to vector<8x128xf32>
    %57 = vector.extract_strided_slice %47 {offsets = [0, 128], sizes = [8, 128], strides = [1, 1]} : vector<8x384xf32> to vector<8x128xf32>
    %58 = arith.addf %56, %57 : vector<8x128xf32>
    %59 = arith.negf %58 : vector<8x128xf32>
    %60 = math.exp %59 : vector<8x128xf32>
    %cst_18 = arith.constant 1.000000e+00 : f32
    %61 = vector.broadcast %cst_18 : f32 to vector<8x128xf32>
    %62 = arith.addf %61, %60 : vector<8x128xf32>
    %63 = arith.divf %61, %62 : vector<8x128xf32>
    %64 = vector.extract_strided_slice %44 {offsets = [0, 256], sizes = [8, 128], strides = [1, 1]} : vector<8x384xf32> to vector<8x128xf32>
    %65 = vector.extract_strided_slice %47 {offsets = [0, 256], sizes = [8, 128], strides = [1, 1]} : vector<8x384xf32> to vector<8x128xf32>
    %66 = arith.mulf %55, %65 : vector<8x128xf32>
    %67 = arith.addf %64, %66 : vector<8x128xf32>
    %68 = math.tanh %67 : vector<8x128xf32>
    %cst_19 = arith.constant 1.000000e+00 : f32
    %69 = vector.broadcast %cst_19 : f32 to vector<8x128xf32>
    %70 = arith.subf %69, %63 : vector<8x128xf32>
    %71 = arith.mulf %70, %68 : vector<8x128xf32>
    %72 = arith.mulf %63, %37 : vector<8x128xf32>
    %73 = arith.addf %71, %72 : vector<8x128xf32>
    %74 = arith.index_cast %c1_i32 : i32 to index
    %c0_20 = arith.constant 0 : index
    %c0_21 = arith.constant 0 : index
    %75 = vector.load %arg5[%74, %c0_20, %c0_21] : memref<8x8x128xf32, #tpu.memory_space<vmem>>, vector<1x8x128xf32>
    %76 = vector.shape_cast %75 : vector<1x8x128xf32> to vector<8x128xf32>
    %77 = vector.shape_cast %73 : vector<8x128xf32> to vector<1x8x128xf32>
    tpu.vector_store %arg5[%74, %c0_20, %c0_21], %77 {strides = array<i32>} : memref<8x8x128xf32, #tpu.memory_space<vmem>>, vector<1x8x128xf32>,
    %c2_i32 = arith.constant 2 : i32
    %78 = arith.index_cast %c2_i32 : i32 to index
    %c0_22 = arith.constant 0 : index
    %c0_23 = arith.constant 0 : index
    %79 = vector.load %arg2[%78, %c0_22, %c0_23] : memref<8x8x384xf32, #tpu.memory_space<vmem>>, vector<1x8x384xf32>
    %80 = vector.shape_cast %79 : vector<1x8x384xf32> to vector<8x384xf32>
    %cst_24 = arith.constant dense<0.000000e+00> : vector<8x384xf32>
    %81 = tpu.matmul %73, %3, %cst_24 {dimension_numbers = #tpu.dot_dimension_numbers<[1], [0], [0], [1], [0, 0, 1, 1], [], []>} : vector<8x128xf32>, vector<128x384xf32>, vector<8x384xf32> -> vector<8x384xf32>
    %82 = vector.broadcast %4 : vector<1x384xf32> to vector<8x384xf32>
    %83 = arith.addf %81, %82 : vector<8x384xf32>
    %84 = vector.extract_strided_slice %80 {offsets = [0, 0], sizes = [8, 128], strides = [1, 1]} : vector<8x384xf32> to vector<8x128xf32>
    %85 = vector.extract_strided_slice %83 {offsets = [0, 0], sizes = [8, 128], strides = [1, 1]} : vector<8x384xf32> to vector<8x128xf32>
    %86 = arith.addf %84, %85 : vector<8x128xf32>
    %87 = arith.negf %86 : vector<8x128xf32>
    %88 = math.exp %87 : vector<8x128xf32>
    %cst_25 = arith.constant 1.000000e+00 : f32
    %89 = vector.broadcast %cst_25 : f32 to vector<8x128xf32>
    %90 = arith.addf %89, %88 : vector<8x128xf32>
    %91 = arith.divf %89, %90 : vector<8x128xf32>
    %92 = vector.extract_strided_slice %80 {offsets = [0, 128], sizes = [8, 128], strides = [1, 1]} : vector<8x384xf32> to vector<8x128xf32>
    %93 = vector.extract_strided_slice %83 {offsets = [0, 128], sizes = [8, 128], strides = [1, 1]} : vector<8x384xf32> to vector<8x128xf32>
    %94 = arith.addf %92, %93 : vector<8x128xf32>
    %95 = arith.negf %94 : vector<8x128xf32>
    %96 = math.exp %95 : vector<8x128xf32>
    %cst_26 = arith.constant 1.000000e+00 : f32
    %97 = vector.broadcast %cst_26 : f32 to vector<8x128xf32>
    %98 = arith.addf %97, %96 : vector<8x128xf32>
    %99 = arith.divf %97, %98 : vector<8x128xf32>
    %100 = vector.extract_strided_slice %80 {offsets = [0, 256], sizes = [8, 128], strides = [1, 1]} : vector<8x384xf32> to vector<8x128xf32>
    %101 = vector.extract_strided_slice %83 {offsets = [0, 256], sizes = [8, 128], strides = [1, 1]} : vector<8x384xf32> to vector<8x128xf32>
    %102 = arith.mulf %91, %101 : vector<8x128xf32>
    %103 = arith.addf %100, %102 : vector<8x128xf32>
    %104 = math.tanh %103 : vector<8x128xf32>
    %cst_27 = arith.constant 1.000000e+00 : f32
    %105 = vector.broadcast %cst_27 : f32 to vector<8x128xf32>
    %106 = arith.subf %105, %99 : vector<8x128xf32>
    %107 = arith.mulf %106, %104 : vector<8x128xf32>
    %108 = arith.mulf %99, %73 : vector<8x128xf32>
    %109 = arith.addf %107, %108 : vector<8x128xf32>
    %110 = arith.index_cast %c2_i32 : i32 to index
    %c0_28 = arith.constant 0 : index
    %c0_29 = arith.constant 0 : index
    %111 = vector.load %arg5[%110, %c0_28, %c0_29] : memref<8x8x128xf32, #tpu.memory_space<vmem>>, vector<1x8x128xf32>
    %112 = vector.shape_cast %111 : vector<1x8x128xf32> to vector<8x128xf32>
    %113 = vector.shape_cast %109 : vector<8x128xf32> to vector<1x8x128xf32>
    tpu.vector_store %arg5[%110, %c0_28, %c0_29], %113 {strides = array<i32>} : memref<8x8x128xf32, #tpu.memory_space<vmem>>, vector<1x8x128xf32>,
    %c3_i32 = arith.constant 3 : i32
    %114 = arith.index_cast %c3_i32 : i32 to index
    %c0_30 = arith.constant 0 : index
    %c0_31 = arith.constant 0 : index
    %115 = vector.load %arg2[%114, %c0_30, %c0_31] : memref<8x8x384xf32, #tpu.memory_space<vmem>>, vector<1x8x384xf32>
    %116 = vector.shape_cast %115 : vector<1x8x384xf32> to vector<8x384xf32>
    %cst_32 = arith.constant dense<0.000000e+00> : vector<8x384xf32>
    %117 = tpu.matmul %109, %3, %cst_32 {dimension_numbers = #tpu.dot_dimension_numbers<[1], [0], [0], [1], [0, 0, 1, 1], [], []>} : vector<8x128xf32>, vector<128x384xf32>, vector<8x384xf32> -> vector<8x384xf32>
    %118 = vector.broadcast %4 : vector<1x384xf32> to vector<8x384xf32>
    %119 = arith.addf %117, %118 : vector<8x384xf32>
    %120 = vector.extract_strided_slice %116 {offsets = [0, 0], sizes = [8, 128], strides = [1, 1]} : vector<8x384xf32> to vector<8x128xf32>
    %121 = vector.extract_strided_slice %119 {offsets = [0, 0], sizes = [8, 128], strides = [1, 1]} : vector<8x384xf32> to vector<8x128xf32>
    %122 = arith.addf %120, %121 : vector<8x128xf32>
    %123 = arith.negf %122 : vector<8x128xf32>
    %124 = math.exp %123 : vector<8x128xf32>
    %cst_33 = arith.constant 1.000000e+00 : f32
    %125 = vector.broadcast %cst_33 : f32 to vector<8x128xf32>
    %126 = arith.addf %125, %124 : vector<8x128xf32>
    %127 = arith.divf %125, %126 : vector<8x128xf32>
    %128 = vector.extract_strided_slice %116 {offsets = [0, 128], sizes = [8, 128], strides = [1, 1]} : vector<8x384xf32> to vector<8x128xf32>
    %129 = vector.extract_strided_slice %119 {offsets = [0, 128], sizes = [8, 128], strides = [1, 1]} : vector<8x384xf32> to vector<8x128xf32>
    %130 = arith.addf %128, %129 : vector<8x128xf32>
    %131 = arith.negf %130 : vector<8x128xf32>
    %132 = math.exp %131 : vector<8x128xf32>
    %cst_34 = arith.constant 1.000000e+00 : f32
    %133 = vector.broadcast %cst_34 : f32 to vector<8x128xf32>
    %134 = arith.addf %133, %132 : vector<8x128xf32>
    %135 = arith.divf %133, %134 : vector<8x128xf32>
    %136 = vector.extract_strided_slice %116 {offsets = [0, 256], sizes = [8, 128], strides = [1, 1]} : vector<8x384xf32> to vector<8x128xf32>
    %137 = vector.extract_strided_slice %119 {offsets = [0, 256], sizes = [8, 128], strides = [1, 1]} : vector<8x384xf32> to vector<8x128xf32>
    %138 = arith.mulf %127, %137 : vector<8x128xf32>
    %139 = arith.addf %136, %138 : vector<8x128xf32>
    %140 = math.tanh %139 : vector<8x128xf32>
    %cst_35 = arith.constant 1.000000e+00 : f32
    %141 = vector.broadcast %cst_35 : f32 to vector<8x128xf32>
    %142 = arith.subf %141, %135 : vector<8x128xf32>
    %143 = arith.mulf %142, %140 : vector<8x128xf32>
    %144 = arith.mulf %135, %109 : vector<8x128xf32>
    %145 = arith.addf %143, %144 : vector<8x128xf32>
    %146 = arith.index_cast %c3_i32 : i32 to index
    %c0_36 = arith.constant 0 : index
    %c0_37 = arith.constant 0 : index
    %147 = vector.load %arg5[%146, %c0_36, %c0_37] : memref<8x8x128xf32, #tpu.memory_space<vmem>>, vector<1x8x128xf32>
    %148 = vector.shape_cast %147 : vector<1x8x128xf32> to vector<8x128xf32>
    %149 = vector.shape_cast %145 : vector<8x128xf32> to vector<1x8x128xf32>
    tpu.vector_store %arg5[%146, %c0_36, %c0_37], %149 {strides = array<i32>} : memref<8x8x128xf32, #tpu.memory_space<vmem>>, vector<1x8x128xf32>,
    %c4_i32 = arith.constant 4 : i32
    %150 = arith.index_cast %c4_i32 : i32 to index
    %c0_38 = arith.constant 0 : index
    %c0_39 = arith.constant 0 : index
    %151 = vector.load %arg2[%150, %c0_38, %c0_39] : memref<8x8x384xf32, #tpu.memory_space<vmem>>, vector<1x8x384xf32>
    %152 = vector.shape_cast %151 : vector<1x8x384xf32> to vector<8x384xf32>
    %cst_40 = arith.constant dense<0.000000e+00> : vector<8x384xf32>
    %153 = tpu.matmul %145, %3, %cst_40 {dimension_numbers = #tpu.dot_dimension_numbers<[1], [0], [0], [1], [0, 0, 1, 1], [], []>} : vector<8x128xf32>, vector<128x384xf32>, vector<8x384xf32> -> vector<8x384xf32>
    %154 = vector.broadcast %4 : vector<1x384xf32> to vector<8x384xf32>
    %155 = arith.addf %153, %154 : vector<8x384xf32>
    %156 = vector.extract_strided_slice %152 {offsets = [0, 0], sizes = [8, 128], strides = [1, 1]} : vector<8x384xf32> to vector<8x128xf32>
    %157 = vector.extract_strided_slice %155 {offsets = [0, 0], sizes = [8, 128], strides = [1, 1]} : vector<8x384xf32> to vector<8x128xf32>
    %158 = arith.addf %156, %157 : vector<8x128xf32>
    %159 = arith.negf %158 : vector<8x128xf32>
    %160 = math.exp %159 : vector<8x128xf32>
    %cst_41 = arith.constant 1.000000e+00 : f32
    %161 = vector.broadcast %cst_41 : f32 to vector<8x128xf32>
    %162 = arith.addf %161, %160 : vector<8x128xf32>
    %163 = arith.divf %161, %162 : vector<8x128xf32>
    %164 = vector.extract_strided_slice %152 {offsets = [0, 128], sizes = [8, 128], strides = [1, 1]} : vector<8x384xf32> to vector<8x128xf32>
    %165 = vector.extract_strided_slice %155 {offsets = [0, 128], sizes = [8, 128], strides = [1, 1]} : vector<8x384xf32> to vector<8x128xf32>
    %166 = arith.addf %164, %165 : vector<8x128xf32>
    %167 = arith.negf %166 : vector<8x128xf32>
    %168 = math.exp %167 : vector<8x128xf32>
    %cst_42 = arith.constant 1.000000e+00 : f32
    %169 = vector.broadcast %cst_42 : f32 to vector<8x128xf32>
    %170 = arith.addf %169, %168 : vector<8x128xf32>
    %171 = arith.divf %169, %170 : vector<8x128xf32>
    %172 = vector.extract_strided_slice %152 {offsets = [0, 256], sizes = [8, 128], strides = [1, 1]} : vector<8x384xf32> to vector<8x128xf32>
    %173 = vector.extract_strided_slice %155 {offsets = [0, 256], sizes = [8, 128], strides = [1, 1]} : vector<8x384xf32> to vector<8x128xf32>
    %174 = arith.mulf %163, %173 : vector<8x128xf32>
    %175 = arith.addf %172, %174 : vector<8x128xf32>
    %176 = math.tanh %175 : vector<8x128xf32>
    %cst_43 = arith.constant 1.000000e+00 : f32
    %177 = vector.broadcast %cst_43 : f32 to vector<8x128xf32>
    %178 = arith.subf %177, %171 : vector<8x128xf32>
    %179 = arith.mulf %178, %176 : vector<8x128xf32>
    %180 = arith.mulf %171, %145 : vector<8x128xf32>
    %181 = arith.addf %179, %180 : vector<8x128xf32>
    %182 = arith.index_cast %c4_i32 : i32 to index
    %c0_44 = arith.constant 0 : index
    %c0_45 = arith.constant 0 : index
    %183 = vector.load %arg5[%182, %c0_44, %c0_45] : memref<8x8x128xf32, #tpu.memory_space<vmem>>, vector<1x8x128xf32>
    %184 = vector.shape_cast %183 : vector<1x8x128xf32> to vector<8x128xf32>
    %185 = vector.shape_cast %181 : vector<8x128xf32> to vector<1x8x128xf32>
    tpu.vector_store %arg5[%182, %c0_44, %c0_45], %185 {strides = array<i32>} : memref<8x8x128xf32, #tpu.memory_space<vmem>>, vector<1x8x128xf32>,
    %c5_i32 = arith.constant 5 : i32
    %186 = arith.index_cast %c5_i32 : i32 to index
    %c0_46 = arith.constant 0 : index
    %c0_47 = arith.constant 0 : index
    %187 = vector.load %arg2[%186, %c0_46, %c0_47] : memref<8x8x384xf32, #tpu.memory_space<vmem>>, vector<1x8x384xf32>
    %188 = vector.shape_cast %187 : vector<1x8x384xf32> to vector<8x384xf32>
    %cst_48 = arith.constant dense<0.000000e+00> : vector<8x384xf32>
    %189 = tpu.matmul %181, %3, %cst_48 {dimension_numbers = #tpu.dot_dimension_numbers<[1], [0], [0], [1], [0, 0, 1, 1], [], []>} : vector<8x128xf32>, vector<128x384xf32>, vector<8x384xf32> -> vector<8x384xf32>
    %190 = vector.broadcast %4 : vector<1x384xf32> to vector<8x384xf32>
    %191 = arith.addf %189, %190 : vector<8x384xf32>
    %192 = vector.extract_strided_slice %188 {offsets = [0, 0], sizes = [8, 128], strides = [1, 1]} : vector<8x384xf32> to vector<8x128xf32>
    %193 = vector.extract_strided_slice %191 {offsets = [0, 0], sizes = [8, 128], strides = [1, 1]} : vector<8x384xf32> to vector<8x128xf32>
    %194 = arith.addf %192, %193 : vector<8x128xf32>
    %195 = arith.negf %194 : vector<8x128xf32>
    %196 = math.exp %195 : vector<8x128xf32>
    %cst_49 = arith.constant 1.000000e+00 : f32
    %197 = vector.broadcast %cst_49 : f32 to vector<8x128xf32>
    %198 = arith.addf %197, %196 : vector<8x128xf32>
    %199 = arith.divf %197, %198 : vector<8x128xf32>
    %200 = vector.extract_strided_slice %188 {offsets = [0, 128], sizes = [8, 128], strides = [1, 1]} : vector<8x384xf32> to vector<8x128xf32>
    %201 = vector.extract_strided_slice %191 {offsets = [0, 128], sizes = [8, 128], strides = [1, 1]} : vector<8x384xf32> to vector<8x128xf32>
    %202 = arith.addf %200, %201 : vector<8x128xf32>
    %203 = arith.negf %202 : vector<8x128xf32>
    %204 = math.exp %203 : vector<8x128xf32>
    %cst_50 = arith.constant 1.000000e+00 : f32
    %205 = vector.broadcast %cst_50 : f32 to vector<8x128xf32>
    %206 = arith.addf %205, %204 : vector<8x128xf32>
    %207 = arith.divf %205, %206 : vector<8x128xf32>
    %208 = vector.extract_strided_slice %188 {offsets = [0, 256], sizes = [8, 128], strides = [1, 1]} : vector<8x384xf32> to vector<8x128xf32>
    %209 = vector.extract_strided_slice %191 {offsets = [0, 256], sizes = [8, 128], strides = [1, 1]} : vector<8x384xf32> to vector<8x128xf32>
    %210 = arith.mulf %199, %209 : vector<8x128xf32>
    %211 = arith.addf %208, %210 : vector<8x128xf32>
    %212 = math.tanh %211 : vector<8x128xf32>
    %cst_51 = arith.constant 1.000000e+00 : f32
    %213 = vector.broadcast %cst_51 : f32 to vector<8x128xf32>
    %214 = arith.subf %213, %207 : vector<8x128xf32>
    %215 = arith.mulf %214, %212 : vector<8x128xf32>
    %216 = arith.mulf %207, %181 : vector<8x128xf32>
    %217 = arith.addf %215, %216 : vector<8x128xf32>
    %218 = arith.index_cast %c5_i32 : i32 to index
    %c0_52 = arith.constant 0 : index
    %c0_53 = arith.constant 0 : index
    %219 = vector.load %arg5[%218, %c0_52, %c0_53] : memref<8x8x128xf32, #tpu.memory_space<vmem>>, vector<1x8x128xf32>
    %220 = vector.shape_cast %219 : vector<1x8x128xf32> to vector<8x128xf32>
    %221 = vector.shape_cast %217 : vector<8x128xf32> to vector<1x8x128xf32>
    tpu.vector_store %arg5[%218, %c0_52, %c0_53], %221 {strides = array<i32>} : memref<8x8x128xf32, #tpu.memory_space<vmem>>, vector<1x8x128xf32>,
    %c6_i32 = arith.constant 6 : i32
    %222 = arith.index_cast %c6_i32 : i32 to index
    %c0_54 = arith.constant 0 : index
    %c0_55 = arith.constant 0 : index
    %223 = vector.load %arg2[%222, %c0_54, %c0_55] : memref<8x8x384xf32, #tpu.memory_space<vmem>>, vector<1x8x384xf32>
    %224 = vector.shape_cast %223 : vector<1x8x384xf32> to vector<8x384xf32>
    %cst_56 = arith.constant dense<0.000000e+00> : vector<8x384xf32>
    %225 = tpu.matmul %217, %3, %cst_56 {dimension_numbers = #tpu.dot_dimension_numbers<[1], [0], [0], [1], [0, 0, 1, 1], [], []>} : vector<8x128xf32>, vector<128x384xf32>, vector<8x384xf32> -> vector<8x384xf32>
    %226 = vector.broadcast %4 : vector<1x384xf32> to vector<8x384xf32>
    %227 = arith.addf %225, %226 : vector<8x384xf32>
    %228 = vector.extract_strided_slice %224 {offsets = [0, 0], sizes = [8, 128], strides = [1, 1]} : vector<8x384xf32> to vector<8x128xf32>
    %229 = vector.extract_strided_slice %227 {offsets = [0, 0], sizes = [8, 128], strides = [1, 1]} : vector<8x384xf32> to vector<8x128xf32>
    %230 = arith.addf %228, %229 : vector<8x128xf32>
    %231 = arith.negf %230 : vector<8x128xf32>
    %232 = math.exp %231 : vector<8x128xf32>
    %cst_57 = arith.constant 1.000000e+00 : f32
    %233 = vector.broadcast %cst_57 : f32 to vector<8x128xf32>
    %234 = arith.addf %233, %232 : vector<8x128xf32>
    %235 = arith.divf %233, %234 : vector<8x128xf32>
    %236 = vector.extract_strided_slice %224 {offsets = [0, 128], sizes = [8, 128], strides = [1, 1]} : vector<8x384xf32> to vector<8x128xf32>
    %237 = vector.extract_strided_slice %227 {offsets = [0, 128], sizes = [8, 128], strides = [1, 1]} : vector<8x384xf32> to vector<8x128xf32>
    %238 = arith.addf %236, %237 : vector<8x128xf32>
    %239 = arith.negf %238 : vector<8x128xf32>
    %240 = math.exp %239 : vector<8x128xf32>
    %cst_58 = arith.constant 1.000000e+00 : f32
    %241 = vector.broadcast %cst_58 : f32 to vector<8x128xf32>
    %242 = arith.addf %241, %240 : vector<8x128xf32>
    %243 = arith.divf %241, %242 : vector<8x128xf32>
    %244 = vector.extract_strided_slice %224 {offsets = [0, 256], sizes = [8, 128], strides = [1, 1]} : vector<8x384xf32> to vector<8x128xf32>
    %245 = vector.extract_strided_slice %227 {offsets = [0, 256], sizes = [8, 128], strides = [1, 1]} : vector<8x384xf32> to vector<8x128xf32>
    %246 = arith.mulf %235, %245 : vector<8x128xf32>
    %247 = arith.addf %244, %246 : vector<8x128xf32>
    %248 = math.tanh %247 : vector<8x128xf32>
    %cst_59 = arith.constant 1.000000e+00 : f32
    %249 = vector.broadcast %cst_59 : f32 to vector<8x128xf32>
    %250 = arith.subf %249, %243 : vector<8x128xf32>
    %251 = arith.mulf %250, %248 : vector<8x128xf32>
    %252 = arith.mulf %243, %217 : vector<8x128xf32>
    %253 = arith.addf %251, %252 : vector<8x128xf32>
    %254 = arith.index_cast %c6_i32 : i32 to index
    %c0_60 = arith.constant 0 : index
    %c0_61 = arith.constant 0 : index
    %255 = vector.load %arg5[%254, %c0_60, %c0_61] : memref<8x8x128xf32, #tpu.memory_space<vmem>>, vector<1x8x128xf32>
    %256 = vector.shape_cast %255 : vector<1x8x128xf32> to vector<8x128xf32>
    %257 = vector.shape_cast %253 : vector<8x128xf32> to vector<1x8x128xf32>
    tpu.vector_store %arg5[%254, %c0_60, %c0_61], %257 {strides = array<i32>} : memref<8x8x128xf32, #tpu.memory_space<vmem>>, vector<1x8x128xf32>,
    %c7_i32 = arith.constant 7 : i32
    %258 = arith.index_cast %c7_i32 : i32 to index
    %c0_62 = arith.constant 0 : index
    %c0_63 = arith.constant 0 : index
    %259 = vector.load %arg2[%258, %c0_62, %c0_63] : memref<8x8x384xf32, #tpu.memory_space<vmem>>, vector<1x8x384xf32>
    %260 = vector.shape_cast %259 : vector<1x8x384xf32> to vector<8x384xf32>
    %cst_64 = arith.constant dense<0.000000e+00> : vector<8x384xf32>
    %261 = tpu.matmul %253, %3, %cst_64 {dimension_numbers = #tpu.dot_dimension_numbers<[1], [0], [0], [1], [0, 0, 1, 1], [], []>} : vector<8x128xf32>, vector<128x384xf32>, vector<8x384xf32> -> vector<8x384xf32>
    %262 = vector.broadcast %4 : vector<1x384xf32> to vector<8x384xf32>
    %263 = arith.addf %261, %262 : vector<8x384xf32>
    %264 = vector.extract_strided_slice %260 {offsets = [0, 0], sizes = [8, 128], strides = [1, 1]} : vector<8x384xf32> to vector<8x128xf32>
    %265 = vector.extract_strided_slice %263 {offsets = [0, 0], sizes = [8, 128], strides = [1, 1]} : vector<8x384xf32> to vector<8x128xf32>
    %266 = arith.addf %264, %265 : vector<8x128xf32>
    %267 = arith.negf %266 : vector<8x128xf32>
    %268 = math.exp %267 : vector<8x128xf32>
    %cst_65 = arith.constant 1.000000e+00 : f32
    %269 = vector.broadcast %cst_65 : f32 to vector<8x128xf32>
    %270 = arith.addf %269, %268 : vector<8x128xf32>
    %271 = arith.divf %269, %270 : vector<8x128xf32>
    %272 = vector.extract_strided_slice %260 {offsets = [0, 128], sizes = [8, 128], strides = [1, 1]} : vector<8x384xf32> to vector<8x128xf32>
    %273 = vector.extract_strided_slice %263 {offsets = [0, 128], sizes = [8, 128], strides = [1, 1]} : vector<8x384xf32> to vector<8x128xf32>
    %274 = arith.addf %272, %273 : vector<8x128xf32>
    %275 = arith.negf %274 : vector<8x128xf32>
    %276 = math.exp %275 : vector<8x128xf32>
    %cst_66 = arith.constant 1.000000e+00 : f32
    %277 = vector.broadcast %cst_66 : f32 to vector<8x128xf32>
    %278 = arith.addf %277, %276 : vector<8x128xf32>
    %279 = arith.divf %277, %278 : vector<8x128xf32>
    %280 = vector.extract_strided_slice %260 {offsets = [0, 256], sizes = [8, 128], strides = [1, 1]} : vector<8x384xf32> to vector<8x128xf32>
    %281 = vector.extract_strided_slice %263 {offsets = [0, 256], sizes = [8, 128], strides = [1, 1]} : vector<8x384xf32> to vector<8x128xf32>
    %282 = arith.mulf %271, %281 : vector<8x128xf32>
    %283 = arith.addf %280, %282 : vector<8x128xf32>
    %284 = math.tanh %283 : vector<8x128xf32>
    %cst_67 = arith.constant 1.000000e+00 : f32
    %285 = vector.broadcast %cst_67 : f32 to vector<8x128xf32>
    %286 = arith.subf %285, %279 : vector<8x128xf32>
    %287 = arith.mulf %286, %284 : vector<8x128xf32>
    %288 = arith.mulf %279, %253 : vector<8x128xf32>
    %289 = arith.addf %287, %288 : vector<8x128xf32>
    %290 = arith.index_cast %c7_i32 : i32 to index
    %c0_68 = arith.constant 0 : index
    %c0_69 = arith.constant 0 : index
    %291 = vector.load %arg5[%290, %c0_68, %c0_69] : memref<8x8x128xf32, #tpu.memory_space<vmem>>, vector<1x8x128xf32>
    %292 = vector.shape_cast %291 : vector<1x8x128xf32> to vector<8x128xf32>
    %293 = vector.shape_cast %289 : vector<8x128xf32> to vector<1x8x128xf32>
    tpu.vector_store %arg5[%290, %c0_68, %c0_69], %293 {strides = array<i32>} : memref<8x8x128xf32, #tpu.memory_space<vmem>>, vector<1x8x128xf32>,
    %c8_i32 = arith.constant 8 : i32
    %c0_70 = arith.constant 0 : index
    %c0_71 = arith.constant 0 : index
    %294 = vector.load %arg6[%c0_70, %c0_71] : memref<8x128xf32, #tpu.memory_space<vmem>>, vector<8x128xf32>
    tpu.vector_store %arg6[%c0_70, %c0_71], %289 {strides = array<i32>} : memref<8x128xf32, #tpu.memory_space<vmem>>, vector<8x128xf32>,
    return
  }
  func.func @transform_0(%arg0: i32, %arg1: i32) -> (i32, i32, i32) {
    %c0_i32 = arith.constant 0 : i32
    %c0_i32_0 = arith.constant 0 : i32
    return %arg1, %arg0, %c0_i32 : i32, i32, i32
  }
  func.func @transform_1(%arg0: i32, %arg1: i32) -> (i32, i32) {
    %c0_i32 = arith.constant 0 : i32
    %c0_i32_0 = arith.constant 0 : i32
    %c0_i32_1 = arith.constant 0 : i32
    return %c0_i32, %c0_i32_0 : i32, i32
  }
  func.func @transform_2(%arg0: i32, %arg1: i32) -> (i32, i32) {
    %c0_i32 = arith.constant 0 : i32
    %c0_i32_0 = arith.constant 0 : i32
    %c0_i32_1 = arith.constant 0 : i32
    return %c0_i32, %c0_i32_0 : i32, i32
  }
  func.func @transform_3(%arg0: i32, %arg1: i32) -> (i32, i32, i32) {
    %c0_i32 = arith.constant 0 : i32
    %c0_i32_0 = arith.constant 0 : i32
    return %arg1, %arg0, %c0_i32 : i32, i32, i32
  }
}

</mosaic_0001>

<bundles_post_ra>
// kernel: encoder_forward.1
= control target key start
LH: loop header
LB: loop body
LE: loop exit
PB: predicated region body
PF: predicated region fallthrough
CT: control target
= control target key end

     0   :  { %v2423_v3 = vmov 0.0|0.0   ;;  %v2424_v4 = vmov 0.0   ;;  %vm2425_vm0 = vmmov 0   ;;  %s3085_s1 = inlined_call_operand.vmem [shape: f32[128,384], index: 1, kind: input, shape index: {}]   ;;  %s3086_s2 = inlined_call_operand.vmem [shape: f32[1,384], index: 2, kind: input, shape index: {}]   ;;  %s3087_s0 = inlined_call_operand.vmem [shape: f32[8,8,384], index: 0, kind: input, shape index: {}]   ;;  %s3088_s3 = inlined_call_operand.vmem [shape: f32[8,8,128], index: 3, kind: output, shape index: {}]  }
   0x1   :  { %v20_v0 = vld [vmem:[%s3085_s1 + $0x8] sm:$0xff]  ;;  %v23_v1 = vld [vmem:[%s3085_s1 + $0x20] sm:$0xff]  ;;  %1924 = vmatprep.subr.bf16.mxu1 %v2423_v3  ;;  %152 = vmatprep.mubr.f32.mxu0 %v2424_v4  ;;  %v22_v6 = vld [vmem:[%s3085_s1 + $0x18] sm:$0xff] }
   0x2   :  { %v19_v2 = vld [vmem:[%s3085_s1] sm:$0xff]  ;;  %v2457_v5 = vpack.c.bf16 %v23_v1, %v20_v0  ;;  %v26_v7 = vld [vmem:[%s3085_s1 + $0x38] sm:$0xff]  ;;  %v29_v8 = vld [vmem:[%s3085_s1 + $0x50] sm:$0xff]  ;;  %1644 = vmatprep.mubr.msk.f32.mxu1 %vm2425_vm0, %v2424_v4 }
   0x3   :  { %v2470_v9 = vpack.c.bf16 %v22_v6, %v19_v2  ;;  %v2472_v10 = vpack.c.bf16 %v29_v8, %v26_v7  ;;  %v25_v11 = vld [vmem:[%s3085_s1 + $0x30] sm:$0xff]  ;;  %v28_v12 = vld [vmem:[%s3085_s1 + $0x48] sm:$0xff]  ;;  %v35_v14 = vld [vmem:[%s3085_s1 + $0x80] sm:$0xff] }
   0x4   :  { %v32_v13 = vld [vmem:[%s3085_s1 + $0x68] sm:$0xff]  ;;  %1893 = vmatprep.subr.bf16.mxu0 %v2457_v5  ;;  %v2488_v15 = vpack.c.bf16 %v28_v12, %v25_v11  ;;  %v31_v17 = vld [vmem:[%s3085_s1 + $0x60] sm:$0xff]  ;;  %v34_v18 = vld [vmem:[%s3085_s1 + $0x78] sm:$0xff] }
   0x5   :  { %1895 = vmatpush1.bf16.msra.mxu0 %v2470_v9  ;;  %v2491_v16 = vpack.c.bf16 %v35_v14, %v32_v13  ;;  %v38_v19 = vld [vmem:[%s3085_s1 + $0x98] sm:$0xff]  ;;  %v41_v20 = vld [vmem:[%s3085_s1 + $0xb0] sm:$0xff]  ;;  %v2506_v21 = vpack.c.bf16 %v34_v18, %v31_v17  ;;  %v40_v24 = vld [vmem:[%s3085_s1 + $0xa8] sm:$0xff]  ;;  %v73_v17 = vlaneseq }
   0x6   :  { %1897 = vmatprep.subr.bf16.mxu0 %v2472_v10  ;;  %v2509_v22 = vpack.c.bf16 %v41_v20, %v38_v19  ;;  %v37_v23 = vld [vmem:[%s3085_s1 + $0x90] sm:$0xff]  ;;  %v44_v25 = vld [vmem:[%s3085_s1 + $0xc8] sm:$0xff]  ;;  %v47_v26 = vld [vmem:[%s3085_s1 + $0xe0] sm:$0xff] }
   0x7   :  { %v21_v27 = vld [vmem:[%s3085_s1 + $0x10] sm:$0xff]  ;;  %v24_v28 = vld [vmem:[%s3085_s1 + $0x28] sm:$0xff]  ;;  %v27_v30 = vld [vmem:[%s3085_s1 + $0x40] sm:$0xff]  ;;  %v2538_v32 = vpack.c.bf16 %v40_v24, %v37_v23  ;;  %v2541_v33 = vpack.c.bf16 %v47_v26, %v44_v25  ;;  %v74_v18 = vshrl.u32 %v73_v17, 7 }
   0x8   :  { %v2529_v29 = vpack.c.bf16 %v24_v28, %v21_v27  ;;  %v30_v31 = vld [vmem:[%s3085_s1 + $0x58] sm:$0xff]  ;;  %v43_v34 = vld [vmem:[%s3085_s1 + $0xc0] sm:$0xff]  ;;  %v53_v38 = vld [vmem:[%s3085_s1 + $0x110] sm:$0xff] }
   0x9   :  { %1899 = vmatpush1.bf16.msra.mxu0 %v2488_v15  ;;  %v46_v35 = vld [vmem:[%s3085_s1 + $0xd8] sm:$0xff]  ;;  %v2553_v37 = vpack.c.bf16 %v30_v31, %v27_v30  ;;  %v33_v39 = vld [vmem:[%s3085_s1 + $0x70] sm:$0xff]  ;;  %v36_v40 = vld [vmem:[%s3085_s1 + $0x88] sm:$0xff]  ;;  %v75_v19 = vsub.s32 0, %v74_v18  ;;  %v79_v23 = vsub.s32 1, %v74_v18 }
   0xa   :  { %1901 = vmatprep.subr.bf16.mxu0 %v2491_v16  ;;  %v50_v36 = vld [vmem:[%s3085_s1 + $0xf8] sm:$0xff]  ;;  %1926 = vmatpush3.bf16.msra.mxu1 %v2529_v29  ;;  %v2566_v41 = vpack.c.bf16 %v46_v35, %v43_v34  ;;  %v49_v43 = vld [vmem:[%s3085_s1 + $0xf0] sm:$0xff]  ;;  %v52_v44 = vld [vmem:[%s3085_s1 + $0x108] sm:$0xff]  ;;  %v2581_v46 = vpack.c.bf16 %v36_v40, %v33_v39 }
   0xb   :  { %1927 = vmatprep.subr.bf16.mxu1 %v2423_v3  ;;  %v2569_v42 = vpack.c.bf16 %v53_v38, %v50_v36  ;;  %v56_v45 = vld [vmem:[%s3085_s1 + $0x128] sm:$0xff]  ;;  %v59_v47 = vld [vmem:[%s3085_s1 + $0x140] sm:$0xff]  ;;  %v42_v49 = vld [vmem:[%s3085_s1 + $0xb8] sm:$0xff]  ;;  %v2594_v50 = vpack.c.bf16 %v52_v44, %v49_v43 }
   0xc   :  { %v39_v48 = vld [vmem:[%s3085_s1 + $0xa0] sm:$0xff]  ;;  %v2597_v51 = vpack.c.bf16 %v59_v47, %v56_v45  ;;  %v58_v53 = vld [vmem:[%s3085_s1 + $0x138] sm:$0xff]  ;;  %v65_v56 = vld [vmem:[%s3085_s1 + $0x170] sm:$0xff]  ;;  %v83_v47 = vsub.s32 2, %v74_v18 }
   0xd   :  { %1903 = vmatpush1.bf16.msra.mxu0 %v2506_v21  ;;  %v55_v52 = vld [vmem:[%s3085_s1 + $0x120] sm:$0xff]  ;;  %v62_v54 = vld [vmem:[%s3085_s1 + $0x158] sm:$0xff]  ;;  %v2609_v55 = vpack.c.bf16 %v42_v49, %v39_v48  ;;  %v45_v57 = vld [vmem:[%s3085_s1 + $0xd0] sm:$0xff] }
   0xe   :  { %1905 = vmatprep.subr.bf16.mxu0 %v2509_v22  ;;  %1929 = vmatpush3.bf16.msra.mxu1 %v2553_v37  ;;  %v48_v58 = vld [vmem:[%s3085_s1 + $0xe8] sm:$0xff]  ;;  %v2622_v59 = vpack.c.bf16 %v58_v53, %v55_v52  ;;  %v2625_v60 = vpack.c.bf16 %v65_v56, %v62_v54  ;;  %v61_v61 = vld [vmem:[%s3085_s1 + $0x150] sm:$0xff]  ;;  %v51_v0 = vld [vmem:[%s3085_s1 + $0x100] sm:$0xff] }
   0xf   :  { %1930 = vmatprep.subr.bf16.mxu1 %v2423_v3  ;;  %v64_v62 = vld [vmem:[%s3085_s1 + $0x168] sm:$0xff]  ;;  %v2634_v63 = vpack.c.bf16 %v48_v58, %v45_v57  ;;  %v54_v1 = vld [vmem:[%s3085_s1 + $0x118] sm:$0xff]  ;;  %v57_v7 = vld [vmem:[%s3085_s1 + $0x130] sm:$0xff] }
  0x10   :  { %v2644_v2 = vpack.c.bf16 %v64_v62, %v61_v61  ;;  %v2648_v6 = vpack.c.bf16 %v54_v1, %v51_v0  ;;  %v60_v8 = vld [vmem:[%s3085_s1 + $0x148] sm:$0xff]  ;;  %v63_v12 = vld [vmem:[%s3085_s1 + $0x160] sm:$0xff]  ;;  %v66_v13 = vld [vmem:[%s3085_s1 + $0x178] sm:$0xff] }
  0x11   :  { %1907 = vmatpush1.bf16.msra.mxu0 %v2538_v32  ;;  %v2659_v11 = vpack.c.bf16 %v60_v8, %v57_v7  ;;  %v2673_v14 = vpack.c.bf16 %v66_v13, %v63_v12  ;;  %v67_v20 = vld [vmem:[%s3086_s2] sm:$0x7]  ;;  %v70_v35 = vld [vmem:[%s3087_s0 + $0x8] sm:$0xff]  ;;  %v71_v56 = vld [vmem:[%s3087_s0 + $0x10] sm:$0xff] }
  0x12   :  { %1909 = vmatprep.subr.bf16.mxu0 %v2541_v33  ;;  %1932 = vmatpush3.bf16.msra.mxu1 %v2581_v46  ;;  %v2715_v24 = vrot.slane %v67_v20, %v75_v19  ;;  %v2717_v25 = vrot.slane %v67_v20, %v79_v23  ;;  %v69_v26 = vld [vmem:[%s3087_s0] sm:$0xff]  ;;  %v2727_v48 = vrot.slane %v67_v20, %v83_v47  ;;  %v1434_v12 = vld [vmem:[%s3087_s0 + $0x18] sm:$0xff] }
  0x13   :  { %1933 = vmatprep.subr.bf16.mxu1 %v2423_v3 }
  0x15   :  { %1911 = vmatpush1.bf16.msra.mxu0 %v2566_v41 }
  0x16   :  { %1913 = vmatprep.subr.bf16.mxu0 %v2569_v42  ;;  %1935 = vmatpush3.bf16.msra.mxu1 %v2609_v55 }
  0x17   :  { %1936 = vmatprep.subr.bf16.mxu1 %v2423_v3 }
  0x19   :  { %1915 = vmatpush1.bf16.msra.mxu0 %v2594_v50 }
  0x1a   :  { %1917 = vmatprep.subr.bf16.mxu0 %v2597_v51  ;;  %1938 = vmatpush3.bf16.msra.mxu1 %v2634_v63 }
  0x1b   :  { %1939 = vmatprep.subr.bf16.mxu1 %v2423_v3 }
  0x1d   :  { %1919 = vmatpush1.bf16.msra.mxu0 %v2622_v59 }
  0x1e   :  { %1921 = vmatprep.subr.bf16.mxu0 %v2625_v60  ;;  %1941 = vmatpush3.bf16.msra.mxu1 %v2648_v6 }
  0x1f   :  { %1942 = vmatprep.subr.bf16.mxu1 %v2423_v3 }
  0x21   :  { %1923 = vmatpush1.bf16.msra.mxu0 %v2644_v2 }
  0x22   :  { %1949 = vmatprep.subr.bf16.mxu0 %v2457_v5  ;;  %1944 = vmatpush3.bf16.msra.mxu1 %v2659_v11 }
  0x23   :  { %1945 = vmatprep.subr.bf16.mxu1 %v2423_v3 }
  0x24   :  { %153 = vmatmul.mubr.f32.vlgmr.msra.gmra.mrb[0].mxu0 %v2424_v4 }
  0x25   :  { %1951 = vmatpush1.bf16.msra.mxu0 %v2470_v9  ;;  %319 = vmatprep.mubr.f32.mxu0 %v2424_v4 }
  0x26   :  { %1953 = vmatprep.subr.bf16.mxu0 %v2472_v10  ;;  %1947 = vmatpush3.bf16.msra.mxu1 %v2673_v14 }
  0x27   :  { %1980 = vmatprep.subr.bf16.mxu1 %v2423_v3 }
  0x29   :  { %1955 = vmatpush1.bf16.msra.mxu0 %v2488_v15  ;;  %1645 = vmatmul.mubr.f32.vlgmr.msra.gmra.mrb[0].mxu1 %v2424_v4 }
  0x2a   :  { %1957 = vmatprep.subr.bf16.mxu0 %v2491_v16  ;;  %1982 = vmatpush3.bf16.msra.mxu1 %v2529_v29 }
  0x2b   :  { %1983 = vmatprep.subr.bf16.mxu1 %v2423_v3  ;;  %1679 = vmatprep.mubr.msk.f32.mxu1 %vm2425_vm0, %v2424_v4 }
  0x2d   :  { %1959 = vmatpush1.bf16.msra.mxu0 %v2506_v21 }
  0x2e   :  { %1961 = vmatprep.subr.bf16.mxu0 %v2509_v22  ;;  %1985 = vmatpush3.bf16.msra.mxu1 %v2553_v37 }
  0x2f   :  { %1986 = vmatprep.subr.bf16.mxu1 %v2423_v3 }
  0x31   :  { %1963 = vmatpush1.bf16.msra.mxu0 %v2538_v32 }
  0x32   :  { %1965 = vmatprep.subr.bf16.mxu0 %v2541_v33  ;;  %1988 = vmatpush3.bf16.msra.mxu1 %v2581_v46 }
  0x33   :  { %1989 = vmatprep.subr.bf16.mxu1 %v2423_v3 }
  0x35   :  { %1967 = vmatpush1.bf16.msra.mxu0 %v2566_v41 }
  0x36   :  { %1969 = vmatprep.subr.bf16.mxu0 %v2569_v42  ;;  %1991 = vmatpush3.bf16.msra.mxu1 %v2609_v55 }
  0x37   :  { %1992 = vmatprep.subr.bf16.mxu1 %v2423_v3 }
  0x39   :  { %1971 = vmatpush1.bf16.msra.mxu0 %v2594_v50 }
  0x3a   :  { %1973 = vmatprep.subr.bf16.mxu0 %v2597_v51  ;;  %1994 = vmatpush3.bf16.msra.mxu1 %v2634_v63 }
  0x3b   :  { %1995 = vmatprep.subr.bf16.mxu1 %v2423_v3 }
  0x3d   :  { %1975 = vmatpush1.bf16.msra.mxu0 %v2622_v59 }
  0x3e   :  { %1977 = vmatprep.subr.bf16.mxu0 %v2625_v60  ;;  %1997 = vmatpush3.bf16.msra.mxu1 %v2648_v6 }
  0x3f   :  { %1998 = vmatprep.subr.bf16.mxu1 %v2423_v3 }
  0x41   :  { %1979 = vmatpush1.bf16.msra.mxu0 %v2644_v2 }
  0x42   :  { %2005 = vmatprep.subr.bf16.mxu0 %v2457_v5  ;;  %2000 = vmatpush3.bf16.msra.mxu1 %v2659_v11 }
  0x43   :  { %2001 = vmatprep.subr.bf16.mxu1 %v2423_v3 }
  0x46   :  { %2003 = vmatpush3.bf16.msra.mxu1 %v2673_v14 }
  0x47   :  { %2036 = vmatprep.subr.bf16.mxu1 %v2423_v3 }
  0xf7   :  { %v154_v27 = vpop.f32.mrb[0].mxu0 }
  0xf8   :  { %v155_v28 = vadd.f32 %v154_v27, %v2715_v24  ;;  %v156_v30 = vpop.f32.mrb[1].mxu0  ;;  %v1435_v27 = vld [vmem:[%s3087_s0 + $0x20] sm:$0xff] }
  0xf9   :  { %v157_v31 = vadd.f32 %v156_v30, %v2717_v25 }
  0xfa   :  { %v229_v34 = vadd.f32 %v155_v28, %v69_v26 }
  0xfb   :  { %v236_v38 = vadd.f32 %v157_v31, %v70_v35 }
  0xfc   :  { %v1432_v36 = vmul.f32 -1.442695, %v229_v34  ;;  %v225_v39 = vpop.f32.mrb[0].mxu1 }
  0xfd   :  { %v1433_v40 = vmul.f32 -1.442695, %v236_v38  ;;  %v1646_v43 = vpop.f32.mrb[1].mxu1  ;;  %v226_v53 = vadd.f32 %v225_v39, %v2727_v48 }
  0xfe   :  { %2343 = vpow2.f32 %v1432_v36  ;;  %v1436_v43 = vld [vmem:[%s3087_s0 + $0x28] sm:$0xff] }
  0xff   :  { %2345 = vpow2.f32 %v1433_v40 }
 0x108   :  { %v2344_v44 = vpop.eup %2343 }
 0x109   :  { %v233_v45 = vadd.f32 1.0, %v2344_v44  ;;  %v2346_v49 = vpop.eup %2345 }
 0x10a   :  { %v240_v52 = vadd.f32 1.0, %v2346_v49 }
 0x10b   :  { %2347 = vrcp.f32 %v233_v45 }
 0x10c   :  { %2349 = vrcp.f32 %v240_v52 }
 0x115   :  { %v2348_v54 = vpop.eup %2347 }
 0x116   :  { %v243_v57 = vmul.f32 %v2348_v54, %v226_v53  ;;  %v2350_v61 = vpop.eup %2349 }
 0x117   :  { %v246_v62 = vsub.f32 1.0, %v2350_v61  ;;  %v248_v7 = vmul.f32 0.0, %v2350_v61 }
 0x118   :  { %v244_v58 = vadd.f32 %v243_v57, %v71_v56  ;;  %v1440_v57 = vld [vmem:[%s3087_s0 + $0x30] sm:$0xff] }
 0x11a   :  { %2351 = vtanh.f32 %v244_v58 }
 0x124   :  { %v2352_v0 = vpop.eup %2351 }
 0x125   :  { %v247_v1 = vmul.f32 %v2352_v0, %v246_v62 }
 0x127   :  { %v2733_v8 = vadd.f32 %v248_v7, %v247_v1 }
 0x129   :  { %250 = vst [vmem:[%s3088_s3] sm:$0xff] %v2733_v8  ;;  %320 = vmatmul.mubr.f32.vlgmr.msra.gmra.mrb[2].mxu0 %v2733_v8  ;;  %1680 = vmatmul.mubr.f32.vlgmr.msra.gmra.mrb[2].mxu1 %v2733_v8 }
 0x12a   :  { %2007 = vmatpush1.bf16.msra.mxu0 %v2470_v9  ;;  %2038 = vmatpush3.bf16.msra.mxu1 %v2529_v29 }
 0x12b   :  { %2009 = vmatprep.subr.bf16.mxu0 %v2472_v10  ;;  %2039 = vmatprep.subr.bf16.mxu1 %v2423_v3 }
 0x12c   :  { %487 = vmatprep.mubr.f32.mxu0 %v2424_v4  ;;  %1714 = vmatprep.mubr.msk.f32.mxu1 %vm2425_vm0, %v2424_v4 }
 0x12e   :  { %2011 = vmatpush1.bf16.msra.mxu0 %v2488_v15  ;;  %2041 = vmatpush3.bf16.msra.mxu1 %v2553_v37 }
 0x12f   :  { %2013 = vmatprep.subr.bf16.mxu0 %v2491_v16  ;;  %2042 = vmatprep.subr.bf16.mxu1 %v2423_v3 }
 0x132   :  { %2015 = vmatpush1.bf16.msra.mxu0 %v2506_v21  ;;  %2044 = vmatpush3.bf16.msra.mxu1 %v2581_v46 }
 0x133   :  { %2017 = vmatprep.subr.bf16.mxu0 %v2509_v22  ;;  %2045 = vmatprep.subr.bf16.mxu1 %v2423_v3 }
 0x136   :  { %2019 = vmatpush1.bf16.msra.mxu0 %v2538_v32  ;;  %2047 = vmatpush3.bf16.msra.mxu1 %v2609_v55 }
 0x137   :  { %2021 = vmatprep.subr.bf16.mxu0 %v2541_v33  ;;  %2048 = vmatprep.subr.bf16.mxu1 %v2423_v3 }
 0x13a   :  { %2023 = vmatpush1.bf16.msra.mxu0 %v2566_v41  ;;  %2050 = vmatpush3.bf16.msra.mxu1 %v2634_v63 }
 0x13b   :  { %2025 = vmatprep.subr.bf16.mxu0 %v2569_v42  ;;  %2051 = vmatprep.subr.bf16.mxu1 %v2423_v3 }
 0x13e   :  { %2027 = vmatpush1.bf16.msra.mxu0 %v2594_v50  ;;  %2053 = vmatpush3.bf16.msra.mxu1 %v2648_v6 }
 0x13f   :  { %2029 = vmatprep.subr.bf16.mxu0 %v2597_v51  ;;  %2054 = vmatprep.subr.bf16.mxu1 %v2423_v3 }
 0x142   :  { %2031 = vmatpush1.bf16.msra.mxu0 %v2622_v59  ;;  %2056 = vmatpush3.bf16.msra.mxu1 %v2659_v11 }
 0x143   :  { %2033 = vmatprep.subr.bf16.mxu0 %v2625_v60  ;;  %2057 = vmatprep.subr.bf16.mxu1 %v2423_v3 }
 0x146   :  { %2035 = vmatpush1.bf16.msra.mxu0 %v2644_v2  ;;  %2059 = vmatpush3.bf16.msra.mxu1 %v2673_v14 }
 0x147   :  { %2061 = vmatprep.subr.bf16.mxu0 %v2457_v5  ;;  %2092 = vmatprep.subr.bf16.mxu1 %v2423_v3 }
 0x1fc   :  { %v321_v13 = vpop.f32.mrb[2].mxu0  ;;  %v392_v17 = vpop.f32.mrb[2].mxu1 }
 0x1fd   :  { %v322_v18 = vadd.f32 %v321_v13, %v2715_v24  ;;  %v323_v19 = vpop.f32.mrb[3].mxu0  ;;  %v1681_v20 = vpop.f32.mrb[3].mxu1  ;;  %v393_v39 = vadd.f32 %v392_v17, %v2727_v48 }
 0x1fe   :  { %v324_v23 = vadd.f32 %v323_v19, %v2717_v25 }
 0x1ff   :  { %v396_v26 = vadd.f32 %v1434_v12, %v322_v18  ;;  %v1441_v12 = vld [vmem:[%s3087_s0 + $0x38] sm:$0xff] }
 0x200   :  { %v403_v30 = vadd.f32 %v1435_v27, %v324_v23 }
 0x201   :  { %v1437_v28 = vmul.f32 -1.442695, %v396_v26 }
 0x202   :  { %v1438_v31 = vmul.f32 -1.442695, %v403_v30  ;;  %v1442_v30 = vld [vmem:[%s3087_s0 + $0x40] sm:$0xff] }
 0x203   :  { %2353 = vpow2.f32 %v1437_v28 }
 0x204   :  { %2355 = vpow2.f32 %v1438_v31 }
 0x20d   :  { %v2354_v34 = vpop.eup %2353 }
 0x20e   :  { %v400_v35 = vadd.f32 1.0, %v2354_v34  ;;  %v2356_v36 = vpop.eup %2355 }
 0x20f   :  { %v407_v38 = vadd.f32 1.0, %v2356_v36 }
 0x210   :  { %2357 = vrcp.f32 %v400_v35 }
 0x211   :  { %2359 = vrcp.f32 %v407_v38 }
 0x21a   :  { %v2358_v40 = vpop.eup %2357 }
 0x21b   :  { %v410_v44 = vmul.f32 %v2358_v40, %v393_v39  ;;  %v2360_v47 = vpop.eup %2359 }
 0x21c   :  { %v413_v49 = vsub.f32 1.0, %v2360_v47  ;;  %v415_v54 = vmul.f32 %v2360_v47, %v2733_v8 }
 0x21d   :  { %v411_v45 = vadd.f32 %v1436_v43, %v410_v44  ;;  %v1446_v44 = vld [vmem:[%s3087_s0 + $0x48] sm:$0xff] }
 0x21f   :  { %2361 = vtanh.f32 %v411_v45 }
 0x229   :  { %v2362_v52 = vpop.eup %2361 }
 0x22a   :  { %v414_v53 = vmul.f32 %v2362_v52, %v413_v49 }
 0x22c   :  { %v2789_v56 = vadd.f32 %v415_v54, %v414_v53 }
 0x22e   :  { %1439 = vst [vmem:[%s3088_s3 + $0x8] sm:$0xff] %v2789_v56  ;;  %488 = vmatmul.mubr.f32.vlgmr.msra.gmra.mrb[4].mxu0 %v2789_v56  ;;  %1715 = vmatmul.mubr.f32.vlgmr.msra.gmra.mrb[4].mxu1 %v2789_v56 }
 0x22f   :  { %2063 = vmatpush1.bf16.msra.mxu0 %v2470_v9  ;;  %2094 = vmatpush3.bf16.msra.mxu1 %v2529_v29 }
 0x230   :  { %2065 = vmatprep.subr.bf16.mxu0 %v2472_v10  ;;  %2095 = vmatprep.subr.bf16.mxu1 %v2423_v3 }
 0x231   :  { %655 = vmatprep.mubr.f32.mxu0 %v2424_v4  ;;  %1749 = vmatprep.mubr.msk.f32.mxu1 %vm2425_vm0, %v2424_v4 }
 0x233   :  { %2067 = vmatpush1.bf16.msra.mxu0 %v2488_v15  ;;  %2097 = vmatpush3.bf16.msra.mxu1 %v2553_v37 }
 0x234   :  { %2069 = vmatprep.subr.bf16.mxu0 %v2491_v16  ;;  %2098 = vmatprep.subr.bf16.mxu1 %v2423_v3 }
 0x237   :  { %2071 = vmatpush1.bf16.msra.mxu0 %v2506_v21  ;;  %2100 = vmatpush3.bf16.msra.mxu1 %v2581_v46 }
 0x238   :  { %2073 = vmatprep.subr.bf16.mxu0 %v2509_v22  ;;  %2101 = vmatprep.subr.bf16.mxu1 %v2423_v3 }
 0x23b   :  { %2075 = vmatpush1.bf16.msra.mxu0 %v2538_v32  ;;  %2103 = vmatpush3.bf16.msra.mxu1 %v2609_v55 }
 0x23c   :  { %2077 = vmatprep.subr.bf16.mxu0 %v2541_v33  ;;  %2104 = vmatprep.subr.bf16.mxu1 %v2423_v3 }
 0x23f   :  { %2079 = vmatpush1.bf16.msra.mxu0 %v2566_v41  ;;  %2106 = vmatpush3.bf16.msra.mxu1 %v2634_v63 }
 0x240   :  { %2081 = vmatprep.subr.bf16.mxu0 %v2569_v42  ;;  %2107 = vmatprep.subr.bf16.mxu1 %v2423_v3 }
 0x243   :  { %2083 = vmatpush1.bf16.msra.mxu0 %v2594_v50  ;;  %2109 = vmatpush3.bf16.msra.mxu1 %v2648_v6 }
 0x244   :  { %2085 = vmatprep.subr.bf16.mxu0 %v2597_v51  ;;  %2110 = vmatprep.subr.bf16.mxu1 %v2423_v3 }
 0x247   :  { %2087 = vmatpush1.bf16.msra.mxu0 %v2622_v59  ;;  %2112 = vmatpush3.bf16.msra.mxu1 %v2659_v11 }
 0x248   :  { %2089 = vmatprep.subr.bf16.mxu0 %v2625_v60  ;;  %2113 = vmatprep.subr.bf16.mxu1 %v2423_v3 }
 0x24b   :  { %2091 = vmatpush1.bf16.msra.mxu0 %v2644_v2  ;;  %2115 = vmatpush3.bf16.msra.mxu1 %v2673_v14 }
 0x24c   :  { %2117 = vmatprep.subr.bf16.mxu0 %v2457_v5  ;;  %2148 = vmatprep.subr.bf16.mxu1 %v2423_v3 }
 0x301   :  { %v489_v58 = vpop.f32.mrb[4].mxu0  ;;  %v560_v61 = vpop.f32.mrb[4].mxu1 }
 0x302   :  { %v490_v62 = vadd.f32 %v489_v58, %v2715_v24  ;;  %v491_v0 = vpop.f32.mrb[5].mxu0  ;;  %v1716_v1 = vpop.f32.mrb[5].mxu1  ;;  %v561_v27 = vadd.f32 %v560_v61, %v2727_v48 }
 0x303   :  { %v492_v7 = vadd.f32 %v491_v0, %v2717_v25 }
 0x304   :  { %v564_v8 = vadd.f32 %v1440_v57, %v490_v62  ;;  %v1447_v57 = vld [vmem:[%s3087_s0 + $0x50] sm:$0xff] }
 0x305   :  { %v571_v17 = vadd.f32 %v1441_v12, %v492_v7 }
 0x306   :  { %v1443_v13 = vmul.f32 -1.442695, %v564_v8 }
 0x307   :  { %v1444_v18 = vmul.f32 -1.442695, %v571_v17  ;;  %v1448_v17 = vld [vmem:[%s3087_s0 + $0x58] sm:$0xff] }
 0x308   :  { %2363 = vpow2.f32 %v1443_v13 }
 0x309   :  { %2365 = vpow2.f32 %v1444_v18 }
 0x312   :  { %v2364_v19 = vpop.eup %2363 }
 0x313   :  { %v568_v20 = vadd.f32 1.0, %v2364_v19  ;;  %v2366_v23 = vpop.eup %2365 }
 0x314   :  { %v575_v26 = vadd.f32 1.0, %v2366_v23 }
 0x315   :  { %2367 = vrcp.f32 %v568_v20 }
 0x316   :  { %2369 = vrcp.f32 %v575_v26 }
 0x31f   :  { %v2368_v28 = vpop.eup %2367 }
 0x320   :  { %v578_v31 = vmul.f32 %v2368_v28, %v561_v27  ;;  %v2370_v35 = vpop.eup %2369 }
 0x321   :  { %v581_v36 = vsub.f32 1.0, %v2370_v35  ;;  %v583_v40 = vmul.f32 %v2370_v35, %v2789_v56 }
 0x322   :  { %v579_v34 = vadd.f32 %v1442_v30, %v578_v31  ;;  %v1452_v31 = vld [vmem:[%s3087_s0 + $0x60] sm:$0xff] }
 0x324   :  { %2371 = vtanh.f32 %v579_v34 }
 0x32e   :  { %v2372_v38 = vpop.eup %2371 }
 0x32f   :  { %v582_v39 = vmul.f32 %v2372_v38, %v581_v36 }
 0x331   :  { %v2845_v43 = vadd.f32 %v583_v40, %v582_v39 }
 0x333   :  { %1445 = vst [vmem:[%s3088_s3 + $0x10] sm:$0xff] %v2845_v43  ;;  %656 = vmatmul.mubr.f32.vlgmr.msra.gmra.mrb[6].mxu0 %v2845_v43  ;;  %1750 = vmatmul.mubr.f32.vlgmr.msra.gmra.mrb[6].mxu1 %v2845_v43 }
 0x334   :  { %2119 = vmatpush1.bf16.msra.mxu0 %v2470_v9  ;;  %2150 = vmatpush3.bf16.msra.mxu1 %v2529_v29 }
 0x335   :  { %2121 = vmatprep.subr.bf16.mxu0 %v2472_v10  ;;  %2151 = vmatprep.subr.bf16.mxu1 %v2423_v3 }
 0x336   :  { %823 = vmatprep.mubr.f32.mxu0 %v2424_v4  ;;  %1784 = vmatprep.mubr.msk.f32.mxu1 %vm2425_vm0, %v2424_v4 }
 0x338   :  { %2123 = vmatpush1.bf16.msra.mxu0 %v2488_v15  ;;  %2153 = vmatpush3.bf16.msra.mxu1 %v2553_v37 }
 0x339   :  { %2125 = vmatprep.subr.bf16.mxu0 %v2491_v16  ;;  %2154 = vmatprep.subr.bf16.mxu1 %v2423_v3 }
 0x33c   :  { %2127 = vmatpush1.bf16.msra.mxu0 %v2506_v21  ;;  %2156 = vmatpush3.bf16.msra.mxu1 %v2581_v46 }
 0x33d   :  { %2129 = vmatprep.subr.bf16.mxu0 %v2509_v22  ;;  %2157 = vmatprep.subr.bf16.mxu1 %v2423_v3 }
 0x340   :  { %2131 = vmatpush1.bf16.msra.mxu0 %v2538_v32  ;;  %2159 = vmatpush3.bf16.msra.mxu1 %v2609_v55 }
 0x341   :  { %2133 = vmatprep.subr.bf16.mxu0 %v2541_v33  ;;  %2160 = vmatprep.subr.bf16.mxu1 %v2423_v3 }
 0x344   :  { %2135 = vmatpush1.bf16.msra.mxu0 %v2566_v41  ;;  %2162 = vmatpush3.bf16.msra.mxu1 %v2634_v63 }
 0x345   :  { %2137 = vmatprep.subr.bf16.mxu0 %v2569_v42  ;;  %2163 = vmatprep.subr.bf16.mxu1 %v2423_v3 }
 0x348   :  { %2139 = vmatpush1.bf16.msra.mxu0 %v2594_v50  ;;  %2165 = vmatpush3.bf16.msra.mxu1 %v2648_v6 }
 0x349   :  { %2141 = vmatprep.subr.bf16.mxu0 %v2597_v51  ;;  %2166 = vmatprep.subr.bf16.mxu1 %v2423_v3 }
 0x34c   :  { %2143 = vmatpush1.bf16.msra.mxu0 %v2622_v59  ;;  %2168 = vmatpush3.bf16.msra.mxu1 %v2659_v11 }
 0x34d   :  { %2145 = vmatprep.subr.bf16.mxu0 %v2625_v60  ;;  %2169 = vmatprep.subr.bf16.mxu1 %v2423_v3 }
 0x350   :  { %2147 = vmatpush1.bf16.msra.mxu0 %v2644_v2  ;;  %2171 = vmatpush3.bf16.msra.mxu1 %v2673_v14 }
 0x351   :  { %2173 = vmatprep.subr.bf16.mxu0 %v2457_v5  ;;  %2204 = vmatprep.subr.bf16.mxu1 %v2423_v3 }
 0x406   :  { %v657_v45 = vpop.f32.mrb[6].mxu0  ;;  %v728_v47 = vpop.f32.mrb[6].mxu1 }
 0x407   :  { %v658_v49 = vadd.f32 %v657_v45, %v2715_v24  ;;  %v659_v52 = vpop.f32.mrb[7].mxu0  ;;  %v1751_v53 = vpop.f32.mrb[7].mxu1  ;;  %v729_v12 = vadd.f32 %v728_v47, %v2727_v48 }
 0x408   :  { %v660_v54 = vadd.f32 %v659_v52, %v2717_v25 }
 0x409   :  { %v732_v56 = vadd.f32 %v1446_v44, %v658_v49  ;;  %v1453_v44 = vld [vmem:[%s3087_s0 + $0x68] sm:$0xff] }
 0x40a   :  { %v739_v61 = vadd.f32 %v1447_v57, %v660_v54 }
 0x40b   :  { %v1449_v58 = vmul.f32 -1.442695, %v732_v56 }
 0x40c   :  { %v1450_v62 = vmul.f32 -1.442695, %v739_v61  ;;  %v1454_v61 = vld [vmem:[%s3087_s0 + $0x70] sm:$0xff] }
 0x40d   :  { %2373 = vpow2.f32 %v1449_v58 }
 0x40e   :  { %2375 = vpow2.f32 %v1450_v62 }
 0x417   :  { %v2374_v0 = vpop.eup %2373 }
 0x418   :  { %v736_v1 = vadd.f32 1.0, %v2374_v0  ;;  %v2376_v7 = vpop.eup %2375 }
 0x419   :  { %v743_v8 = vadd.f32 1.0, %v2376_v7 }
 0x41a   :  { %2377 = vrcp.f32 %v736_v1 }
 0x41b   :  { %2379 = vrcp.f32 %v743_v8 }
 0x424   :  { %v2378_v13 = vpop.eup %2377 }
 0x425   :  { %v746_v18 = vmul.f32 %v2378_v13, %v729_v12  ;;  %v2380_v20 = vpop.eup %2379 }
 0x426   :  { %v749_v23 = vsub.f32 1.0, %v2380_v20  ;;  %v751_v28 = vmul.f32 %v2380_v20, %v2845_v43 }
 0x427   :  { %v747_v19 = vadd.f32 %v1448_v17, %v746_v18  ;;  %v1458_v18 = vld [vmem:[%s3087_s0 + $0x78] sm:$0xff] }
 0x429   :  { %2381 = vtanh.f32 %v747_v19 }
 0x433   :  { %v2382_v26 = vpop.eup %2381 }
 0x434   :  { %v750_v27 = vmul.f32 %v2382_v26, %v749_v23 }
 0x436   :  { %v2901_v30 = vadd.f32 %v751_v28, %v750_v27 }
 0x438   :  { %1451 = vst [vmem:[%s3088_s3 + $0x18] sm:$0xff] %v2901_v30  ;;  %824 = vmatmul.mubr.f32.vlgmr.msra.gmra.mrb[8].mxu0 %v2901_v30  ;;  %1785 = vmatmul.mubr.f32.vlgmr.msra.gmra.mrb[8].mxu1 %v2901_v30 }
 0x439   :  { %2175 = vmatpush1.bf16.msra.mxu0 %v2470_v9  ;;  %2206 = vmatpush3.bf16.msra.mxu1 %v2529_v29 }
 0x43a   :  { %2177 = vmatprep.subr.bf16.mxu0 %v2472_v10  ;;  %2207 = vmatprep.subr.bf16.mxu1 %v2423_v3 }
 0x43b   :  { %991 = vmatprep.mubr.f32.mxu0 %v2424_v4  ;;  %1819 = vmatprep.mubr.msk.f32.mxu1 %vm2425_vm0, %v2424_v4 }
 0x43d   :  { %2179 = vmatpush1.bf16.msra.mxu0 %v2488_v15  ;;  %2209 = vmatpush3.bf16.msra.mxu1 %v2553_v37 }
 0x43e   :  { %2181 = vmatprep.subr.bf16.mxu0 %v2491_v16  ;;  %2210 = vmatprep.subr.bf16.mxu1 %v2423_v3 }
 0x441   :  { %2183 = vmatpush1.bf16.msra.mxu0 %v2506_v21  ;;  %2212 = vmatpush3.bf16.msra.mxu1 %v2581_v46 }
 0x442   :  { %2185 = vmatprep.subr.bf16.mxu0 %v2509_v22  ;;  %2213 = vmatprep.subr.bf16.mxu1 %v2423_v3 }
 0x445   :  { %2187 = vmatpush1.bf16.msra.mxu0 %v2538_v32  ;;  %2215 = vmatpush3.bf16.msra.mxu1 %v2609_v55 }
 0x446   :  { %2189 = vmatprep.subr.bf16.mxu0 %v2541_v33  ;;  %2216 = vmatprep.subr.bf16.mxu1 %v2423_v3 }
 0x449   :  { %2191 = vmatpush1.bf16.msra.mxu0 %v2566_v41  ;;  %2218 = vmatpush3.bf16.msra.mxu1 %v2634_v63 }
 0x44a   :  { %2193 = vmatprep.subr.bf16.mxu0 %v2569_v42  ;;  %2219 = vmatprep.subr.bf16.mxu1 %v2423_v3 }
 0x44d   :  { %2195 = vmatpush1.bf16.msra.mxu0 %v2594_v50  ;;  %2221 = vmatpush3.bf16.msra.mxu1 %v2648_v6 }
 0x44e   :  { %2197 = vmatprep.subr.bf16.mxu0 %v2597_v51  ;;  %2222 = vmatprep.subr.bf16.mxu1 %v2423_v3 }
 0x451   :  { %2199 = vmatpush1.bf16.msra.mxu0 %v2622_v59  ;;  %2224 = vmatpush3.bf16.msra.mxu1 %v2659_v11 }
 0x452   :  { %2201 = vmatprep.subr.bf16.mxu0 %v2625_v60  ;;  %2225 = vmatprep.subr.bf16.mxu1 %v2423_v3 }
 0x455   :  { %2203 = vmatpush1.bf16.msra.mxu0 %v2644_v2  ;;  %2227 = vmatpush3.bf16.msra.mxu1 %v2673_v14 }
 0x456   :  { %2229 = vmatprep.subr.bf16.mxu0 %v2457_v5  ;;  %2260 = vmatprep.subr.bf16.mxu1 %v2423_v3 }
 0x50b   :  { %v825_v34 = vpop.f32.mrb[8].mxu0  ;;  %v896_v35 = vpop.f32.mrb[8].mxu1 }
 0x50c   :  { %v826_v36 = vadd.f32 %v825_v34, %v2715_v24  ;;  %v827_v38 = vpop.f32.mrb[9].mxu0  ;;  %v1786_v39 = vpop.f32.mrb[9].mxu1  ;;  %v897_v57 = vadd.f32 %v896_v35, %v2727_v48 }
 0x50d   :  { %v828_v40 = vadd.f32 %v827_v38, %v2717_v25 }
 0x50e   :  { %v900_v43 = vadd.f32 %v1452_v31, %v826_v36  ;;  %v1459_v31 = vld [vmem:[%s3087_s0 + $0x80] sm:$0xff] }
 0x50f   :  { %v907_v47 = vadd.f32 %v1453_v44, %v828_v40 }
 0x510   :  { %v1455_v45 = vmul.f32 -1.442695, %v900_v43 }
 0x511   :  { %v1456_v49 = vmul.f32 -1.442695, %v907_v47 }
 0x512   :  { %2383 = vpow2.f32 %v1455_v45  ;;  %v1460_v45 = vld [vmem:[%s3087_s0 + $0x88] sm:$0xff] }
 0x513   :  { %2385 = vpow2.f32 %v1456_v49 }
 0x51c   :  { %v2384_v52 = vpop.eup %2383 }
 0x51d   :  { %v904_v53 = vadd.f32 1.0, %v2384_v52  ;;  %v2386_v54 = vpop.eup %2385 }
 0x51e   :  { %v911_v56 = vadd.f32 1.0, %v2386_v54 }
 0x51f   :  { %2387 = vrcp.f32 %v904_v53 }
 0x520   :  { %2389 = vrcp.f32 %v911_v56 }
 0x529   :  { %v2388_v58 = vpop.eup %2387 }
 0x52a   :  { %v914_v62 = vmul.f32 %v2388_v58, %v897_v57  ;;  %v2390_v1 = vpop.eup %2389 }
 0x52b   :  { %v917_v7 = vsub.f32 1.0, %v2390_v1  ;;  %v919_v13 = vmul.f32 %v2390_v1, %v2901_v30 }
 0x52c   :  { %v915_v0 = vadd.f32 %v1454_v61, %v914_v62 }
 0x52e   :  { %2391 = vtanh.f32 %v915_v0  ;;  %v1470_v0 = vld [vmem:[%s3087_s0 + $0xa8] sm:$0xff] }
 0x538   :  { %v2392_v8 = vpop.eup %2391 }
 0x539   :  { %v918_v12 = vmul.f32 %v2392_v8, %v917_v7 }
 0x53b   :  { %v2957_v17 = vadd.f32 %v919_v13, %v918_v12 }
 0x53d   :  { %1457 = vst [vmem:[%s3088_s3 + $0x20] sm:$0xff] %v2957_v17  ;;  %992 = vmatmul.mubr.f32.vlgmr.msra.gmra.mrb[10].mxu0 %v2957_v17  ;;  %1820 = vmatmul.mubr.f32.vlgmr.msra.gmra.mrb[10].mxu1 %v2957_v17 }
 0x53e   :  { %2231 = vmatpush1.bf16.msra.mxu0 %v2470_v9  ;;  %2262 = vmatpush3.bf16.msra.mxu1 %v2529_v29 }
 0x53f   :  { %2233 = vmatprep.subr.bf16.mxu0 %v2472_v10  ;;  %2263 = vmatprep.subr.bf16.mxu1 %v2423_v3 }
 0x540   :  { %1159 = vmatprep.mubr.f32.mxu0 %v2424_v4  ;;  %1854 = vmatprep.mubr.msk.f32.mxu1 %vm2425_vm0, %v2424_v4 }
 0x542   :  { %2235 = vmatpush1.bf16.msra.mxu0 %v2488_v15  ;;  %2265 = vmatpush3.bf16.msra.mxu1 %v2553_v37 }
 0x543   :  { %2237 = vmatprep.subr.bf16.mxu0 %v2491_v16  ;;  %2266 = vmatprep.subr.bf16.mxu1 %v2423_v3 }
 0x546   :  { %2239 = vmatpush1.bf16.msra.mxu0 %v2506_v21  ;;  %2268 = vmatpush3.bf16.msra.mxu1 %v2581_v46 }
 0x547   :  { %2241 = vmatprep.subr.bf16.mxu0 %v2509_v22  ;;  %2269 = vmatprep.subr.bf16.mxu1 %v2423_v3 }
 0x54a   :  { %2243 = vmatpush1.bf16.msra.mxu0 %v2538_v32  ;;  %2271 = vmatpush3.bf16.msra.mxu1 %v2609_v55 }
 0x54b   :  { %2245 = vmatprep.subr.bf16.mxu0 %v2541_v33  ;;  %2272 = vmatprep.subr.bf16.mxu1 %v2423_v3 }
 0x54e   :  { %2247 = vmatpush1.bf16.msra.mxu0 %v2566_v41  ;;  %2274 = vmatpush3.bf16.msra.mxu1 %v2634_v63 }
 0x54f   :  { %2249 = vmatprep.subr.bf16.mxu0 %v2569_v42  ;;  %2275 = vmatprep.subr.bf16.mxu1 %v2423_v3 }
 0x552   :  { %2251 = vmatpush1.bf16.msra.mxu0 %v2594_v50  ;;  %2277 = vmatpush3.bf16.msra.mxu1 %v2648_v6 }
 0x553   :  { %2253 = vmatprep.subr.bf16.mxu0 %v2597_v51  ;;  %2278 = vmatprep.subr.bf16.mxu1 %v2423_v3 }
 0x556   :  { %2255 = vmatpush1.bf16.msra.mxu0 %v2622_v59  ;;  %2280 = vmatpush3.bf16.msra.mxu1 %v2659_v11 }
 0x557   :  { %2257 = vmatprep.subr.bf16.mxu0 %v2625_v60  ;;  %2281 = vmatprep.subr.bf16.mxu1 %v2423_v3 }
 0x55a   :  { %2259 = vmatpush1.bf16.msra.mxu0 %v2644_v2  ;;  %2283 = vmatpush3.bf16.msra.mxu1 %v2673_v14 }
 0x55b   :  { %2285 = vmatprep.subr.bf16.mxu0 %v2457_v5  ;;  %2316 = vmatprep.subr.bf16.mxu1 %v2423_v3 }
 0x610   :  { %v993_v19 = vpop.f32.mrb[10].mxu0  ;;  %v1064_v20 = vpop.f32.mrb[10].mxu1 }
 0x611   :  { %v994_v23 = vadd.f32 %v993_v19, %v2715_v24  ;;  %v995_v26 = vpop.f32.mrb[11].mxu0  ;;  %v1821_v27 = vpop.f32.mrb[11].mxu1  ;;  %v1065_v43 = vadd.f32 %v1064_v20, %v2727_v48  ;;  %v1471_v19 = vld [vmem:[%s3087_s0 + $0xb0] sm:$0xff] }
 0x612   :  { %v996_v28 = vadd.f32 %v995_v26, %v2717_v25 }
 0x613   :  { %v1068_v30 = vadd.f32 %v1458_v18, %v994_v23 }
 0x614   :  { %v1075_v34 = vadd.f32 %v1459_v31, %v996_v28 }
 0x615   :  { %v1461_v5 = vmul.f32 -1.442695, %v1068_v30 }
 0x616   :  { %v1462_v35 = vmul.f32 -1.442695, %v1075_v34 }
 0x617   :  { %2393 = vpow2.f32 %v1461_v5 }
 0x618   :  { %2395 = vpow2.f32 %v1462_v35 }
 0x621   :  { %v2394_v36 = vpop.eup %2393 }
 0x622   :  { %v1072_v38 = vadd.f32 1.0, %v2394_v36  ;;  %v2396_v39 = vpop.eup %2395 }
 0x623   :  { %v1079_v40 = vadd.f32 1.0, %v2396_v39 }
 0x624   :  { %2397 = vrcp.f32 %v1072_v38 }
 0x625   :  { %2399 = vrcp.f32 %v1079_v40 }
 0x62e   :  { %v2398_v44 = vpop.eup %2397 }
 0x62f   :  { %v1082_v47 = vmul.f32 %v2398_v44, %v1065_v43  ;;  %v2400_v52 = vpop.eup %2399 }
 0x630   :  { %v1085_v53 = vsub.f32 1.0, %v2400_v52  ;;  %v1087_v57 = vmul.f32 %v2400_v52, %v2957_v17 }
 0x631   :  { %v1083_v49 = vadd.f32 %v1460_v45, %v1082_v47 }
 0x633   :  { %2401 = vtanh.f32 %v1083_v49 }
 0x63d   :  { %v2402_v54 = vpop.eup %2401 }
 0x63e   :  { %v1086_v56 = vmul.f32 %v2402_v54, %v1085_v53 }
 0x640   :  { %v3013_v58 = vadd.f32 %v1087_v57, %v1086_v56 }
 0x642   :  { %1463 = vst [vmem:[%s3088_s3 + $0x28] sm:$0xff] %v3013_v58  ;;  %1160 = vmatmul.mubr.f32.vlgmr.msra.gmra.mrb[12].mxu0 %v3013_v58  ;;  %1855 = vmatmul.mubr.f32.vlgmr.msra.gmra.mrb[12].mxu1 %v3013_v58 }
 0x643   :  { %2287 = vmatpush1.bf16.msra.mxu0 %v2470_v9  ;;  %2318 = vmatpush3.bf16.msra.mxu1 %v2529_v29 }
 0x644   :  { %2289 = vmatprep.subr.bf16.mxu0 %v2472_v10  ;;  %2319 = vmatprep.subr.bf16.mxu1 %v2423_v3 }
 0x645   :  { %1327 = vmatprep.mubr.f32.mxu0 %v2424_v4  ;;  %1889 = vmatprep.mubr.msk.f32.mxu1 %vm2425_vm0, %v2424_v4  ;;  %v1464_v4 = vld [vmem:[%s3087_s0 + $0x90] sm:$0xff] }
 0x647   :  { %2291 = vmatpush1.bf16.msra.mxu0 %v2488_v15  ;;  %2321 = vmatpush3.bf16.msra.mxu1 %v2553_v37 }
 0x648   :  { %2293 = vmatprep.subr.bf16.mxu0 %v2491_v16  ;;  %2322 = vmatprep.subr.bf16.mxu1 %v2423_v3 }
 0x64b   :  { %2295 = vmatpush1.bf16.msra.mxu0 %v2506_v21  ;;  %2324 = vmatpush3.bf16.msra.mxu1 %v2581_v46 }
 0x64c   :  { %2297 = vmatprep.subr.bf16.mxu0 %v2509_v22  ;;  %2325 = vmatprep.subr.bf16.mxu1 %v2423_v3 }
 0x64f   :  { %2299 = vmatpush1.bf16.msra.mxu0 %v2538_v32  ;;  %2327 = vmatpush3.bf16.msra.mxu1 %v2609_v55 }
 0x650   :  { %2301 = vmatprep.subr.bf16.mxu0 %v2541_v33  ;;  %2328 = vmatprep.subr.bf16.mxu1 %v2423_v3 }
 0x653   :  { %2303 = vmatpush1.bf16.msra.mxu0 %v2566_v41  ;;  %2330 = vmatpush3.bf16.msra.mxu1 %v2634_v63 }
 0x654   :  { %2305 = vmatprep.subr.bf16.mxu0 %v2569_v42  ;;  %2331 = vmatprep.subr.bf16.mxu1 %v2423_v3 }
 0x657   :  { %2307 = vmatpush1.bf16.msra.mxu0 %v2594_v50  ;;  %2333 = vmatpush3.bf16.msra.mxu1 %v2648_v6 }
 0x658   :  { %2309 = vmatprep.subr.bf16.mxu0 %v2597_v51  ;;  %2334 = vmatprep.subr.bf16.mxu1 %v2423_v3 }
 0x65b   :  { %2311 = vmatpush1.bf16.msra.mxu0 %v2622_v59  ;;  %2336 = vmatpush3.bf16.msra.mxu1 %v2659_v11  ;;  %v1466_v59 = vld [vmem:[%s3087_s0 + $0xa0] sm:$0xff] }
 0x65c   :  { %2313 = vmatprep.subr.bf16.mxu0 %v2625_v60  ;;  %2337 = vmatprep.subr.bf16.mxu1 %v2423_v3  ;;  %v1465_v3 = vld [vmem:[%s3087_s0 + $0x98] sm:$0xff] }
 0x65f   :  { %2315 = vmatpush1.bf16.msra.mxu0 %v2644_v2  ;;  %2339 = vmatpush3.bf16.msra.mxu1 %v2673_v14 }
 0x715   :  { %v1161_v9 = vpop.f32.mrb[12].mxu0  ;;  %v1232_v10 = vpop.f32.mrb[12].mxu1 }
 0x716   :  { %v1162_v15 = vadd.f32 %v1161_v9, %v2715_v24  ;;  %v1163_v16 = vpop.f32.mrb[13].mxu0  ;;  %v1856_v21 = vpop.f32.mrb[13].mxu1  ;;  %v1233_v51 = vadd.f32 %v1232_v10, %v2727_v48 }
 0x717   :  { %v1164_v22 = vadd.f32 %v1163_v16, %v2717_v25 }
 0x718   :  { %v1236_v29 = vadd.f32 %v1464_v4, %v1162_v15 }
 0x719   :  { %v1243_v33 = vadd.f32 %v1465_v3, %v1164_v22 }
 0x71a   :  { %v1467_v32 = vmul.f32 -1.442695, %v1236_v29 }
 0x71b   :  { %v1468_v37 = vmul.f32 -1.442695, %v1243_v33 }
 0x71c   :  { %2403 = vpow2.f32 %v1467_v32 }
 0x71d   :  { %2405 = vpow2.f32 %v1468_v37 }
 0x726   :  { %v2404_v41 = vpop.eup %2403 }
 0x727   :  { %v1240_v42 = vadd.f32 1.0, %v2404_v41  ;;  %v2406_v46 = vpop.eup %2405 }
 0x728   :  { %v1247_v50 = vadd.f32 1.0, %v2406_v46 }
 0x729   :  { %2407 = vrcp.f32 %v1240_v42 }
 0x72a   :  { %2409 = vrcp.f32 %v1247_v50 }
 0x733   :  { %v2408_v55 = vpop.eup %2407 }
 0x734   :  { %v1250_v60 = vmul.f32 %v2408_v55, %v1233_v51  ;;  %v2410_v2 = vpop.eup %2409 }
 0x735   :  { %v1253_v6 = vsub.f32 1.0, %v2410_v2  ;;  %v1255_v61 = vmul.f32 %v2410_v2, %v3013_v58 }
 0x736   :  { %v1251_v63 = vadd.f32 %v1466_v59, %v1250_v60 }
 0x738   :  { %2411 = vtanh.f32 %v1251_v63 }
 0x742   :  { %v2412_v11 = vpop.eup %2411 }
 0x743   :  { %v1254_v14 = vmul.f32 %v2412_v11, %v1253_v6 }
 0x745   :  { %v1256_v62 = vadd.f32 %v1255_v61, %v1254_v14 }
 0x747   :  { %1469 = vst [vmem:[%s3088_s3 + $0x30] sm:$0xff] %v1256_v62  ;;  %1328 = vmatmul.mubr.f32.vlgmr.msra.gmra.mrb[14].mxu0 %v1256_v62  ;;  %1890 = vmatmul.mubr.f32.vlgmr.msra.gmra.mrb[14].mxu1 %v1256_v62 }
 0x81a   :  { %v1329_v1 = vpop.f32.mrb[14].mxu0  ;;  %v1400_v7 = vpop.f32.mrb[14].mxu1 }
 0x81b   :  { %v1330_v8 = vadd.f32 %v1329_v1, %v2715_v24  ;;  %v1331_v12 = vpop.f32.mrb[15].mxu0  ;;  %v1891_v13 = vpop.f32.mrb[15].mxu1  ;;  %v1401_v24 = vadd.f32 %v1400_v7, %v2727_v48 }
 0x81c   :  { %v1332_v17 = vadd.f32 %v1331_v12, %v2717_v25  ;;  %v1472_v25 = vld [vmem:[%s3087_s0 + $0xb8] sm:$0xff] }
 0x81d   :  { %v1404_v18 = vadd.f32 %v1470_v0, %v1330_v8 }
 0x81e   :  { %v1411_v23 = vadd.f32 %v1471_v19, %v1332_v17 }
 0x81f   :  { %v1473_v20 = vmul.f32 -1.442695, %v1404_v18 }
 0x820   :  { %v1474_v26 = vmul.f32 -1.442695, %v1411_v23 }
 0x821   :  { %2413 = vpow2.f32 %v1473_v20 }
 0x822   :  { %2415 = vpow2.f32 %v1474_v26 }
 0x82b   :  { %v2414_v27 = vpop.eup %2413 }
 0x82c   :  { %v1408_v28 = vadd.f32 1.0, %v2414_v27  ;;  %v2416_v30 = vpop.eup %2415 }
 0x82d   :  { %v1415_v31 = vadd.f32 1.0, %v2416_v30 }
 0x82e   :  { %2417 = vrcp.f32 %v1408_v28 }
 0x82f   :  { %2419 = vrcp.f32 %v1415_v31 }
 0x838   :  { %v2418_v5 = vpop.eup %2417 }
 0x839   :  { %v1418_v34 = vmul.f32 %v2418_v5, %v1401_v24  ;;  %v2420_v36 = vpop.eup %2419 }
 0x83a   :  { %v1421_v38 = vsub.f32 1.0, %v2420_v36  ;;  %v1423_v43 = vmul.f32 %v2420_v36, %v1256_v62 }
 0x83b   :  { %v1419_v35 = vadd.f32 %v1472_v25, %v1418_v34 }
 0x83d   :  { %2421 = vtanh.f32 %v1419_v35 }
 0x847   :  { %v2422_v39 = vpop.eup %2421 }
 0x848   :  { %v1422_v40 = vmul.f32 %v2422_v39, %v1421_v38 }
 0x84a   :  { %v1424_v44 = vadd.f32 %v1423_v43, %v1422_v40 }
 0x84c   :  { %1475 = vst [vmem:[%s3088_s3 + $0x38] sm:$0xff] %v1424_v44 }

</bundles_post_ra>
